<compile_context>
chip_gen: v5e
topology: v5e:2x2
jax: 0.10.0
libtpu: 0.0.40
codegen_flags: <defaults>
</compile_context>

<pallas_src>
import math

import jax
import jax.numpy as jnp
from jax.experimental import pallas as pl
from jax.experimental.pallas import tpu as pltpu

LANE = 128
BATCH_ALIGN = 16  # bf16 packs 16 rows per sublane-tile


def _round_up(x, m):
    return (x + m - 1) // m * m


def _mlp_kernel(x_ref,
                w1_ref, b1_ref,
                w2_ref, b2_ref,
                w3_ref, b3_ref,
                w4_ref, b4_ref,
                w5_ref, b5_ref,
                o_ref):
    """Fused 5-layer MLP: bf16 MXU inputs, fp32 accumulate, bf16 bias/ReLU."""

    def hidden(h, w_ref, b_ref):
        acc = jnp.dot(h, w_ref[...], preferred_element_type=jnp.float32)
        # bias-add + ReLU in bf16 (halves VPU work / intermediate traffic)
        return jnp.maximum(acc.astype(jnp.bfloat16) + b_ref[...], 0)

    h = x_ref[...]                      # already bf16 (cast in wrapper)
    h = hidden(h, w1_ref, b1_ref)
    h = hidden(h, w2_ref, b2_ref)
    h = hidden(h, w3_ref, b3_ref)
    h = hidden(h, w4_ref, b4_ref)

    acc = jnp.dot(h, w5_ref[...], preferred_element_type=jnp.float32)
    o_ref[...] = (acc + b5_ref[...]).astype(o_ref.dtype)


def base_network_forward(x_nchw, params, num_classes=10, batch_tile=512):
    """Runs the batch-tiled fused MLP kernel.

    Args:
      x_nchw: (B, 1, 28, 28) float32 input (PyTorch NCHW layout).
      params: list of (W, b), W shaped (in, out), b shaped (1, out) or (out,).
    Returns:
      (B, num_classes) logits, float32.
    """
    B = x_nchw.shape[0]
    x_flat = x_nchw.reshape(B, -1).astype(jnp.float32)
    in_features = x_flat.shape[1]
    k1 = _round_up(in_features, LANE)           # 784 -> 896
    n_out_pad = _round_up(num_classes, LANE)    # 10  -> 128

    # Batch tile: multiple of 16 (bf16 packing).  Clamp so the grid has >= 2
    # steps whenever B allows it (v7x megacore sharding across 2 TCs).
    half = _round_up(max(1, -(-B // 2)), BATCH_ALIGN)
    TB = max(BATCH_ALIGN, min(batch_tile, half))
    Bp = _round_up(B, TB)

    # Input: pad batch rows / K columns with zeros, cast to bf16 in the wrapper.
    x_pad = jnp.pad(x_flat, ((0, Bp - B), (0, k1 - in_features))).astype(jnp.bfloat16)

    # Weights/biases in bf16; pad layer-1 K and last-layer output lanes.
    ws, bs = [], []
    n_layers = len(params)
    for idx, (w, b) in enumerate(params):
        b = b.reshape(1, -1)                    # normalize (out,) -> (1, out)
        if idx == 0 and w.shape[0] != k1:
            w = jnp.pad(w, ((0, k1 - w.shape[0]), (0, 0)))
        if idx == n_layers - 1:
            w = jnp.pad(w, ((0, 0), (0, n_out_pad - w.shape[1])))
            b = jnp.pad(b, ((0, 0), (0, n_out_pad - b.shape[1])))
        ws.append(w.astype(jnp.bfloat16))
        bs.append(b.astype(jnp.bfloat16))

    grid = (Bp // TB,)

    def pinned(shape):
        # Constant block index -> DMA'd once, stays VMEM-resident across steps.
        # Single-buffered: no point double-buffering a grid-invariant block.
        index_map = lambda i: (0,) * len(shape)
        try:
            return pl.BlockSpec(shape, index_map, pipeline_mode=pl.Buffered(1))
        except Exception:  # older jax without pipeline_mode / Buffered
            return pl.BlockSpec(shape, index_map)

    in_specs = [pl.BlockSpec((TB, k1), lambda i: (i, 0))]
    flat_args = [x_pad]
    for w, b in zip(ws, bs):
        in_specs += [pinned(w.shape), pinned(b.shape)]
        flat_args += [w, b]

    out_spec = pl.BlockSpec((TB, n_out_pad), lambda i: (i, 0))

    flops = 2 * Bp * sum(int(w.shape[0]) * int(w.shape[1]) for w in ws)
    bytes_accessed = (int(x_pad.size) * 2
                      + sum(int(w.size) * 2 for w in ws)
                      + sum(int(b.size) * 2 for b in bs)
                      + Bp * n_out_pad * 2)
    cost = pl.CostEstimate(flops=flops, transcendentals=0,
                           bytes_accessed=bytes_accessed)

    out = pl.pallas_call(
        _mlp_kernel,
        out_shape=jax.ShapeDtypeStruct((Bp, n_out_pad), jnp.bfloat16),
        grid=grid,
        in_specs=in_specs,
        out_specs=out_spec,
        compiler_params=pltpu.CompilerParams(
            dimension_semantics=("parallel",),   # megacore sharding on v7x
            vmem_limit_bytes=32 << 20,
        ),
        cost_estimate=cost,
    )(*flat_args)

    return out[:B, :num_classes].astype(jnp.float32)


def init_params(key, input_size=784, num_classes=10,
                hidden_sizes=(512, 256, 256, 128)):
    """Init mirroring PyTorch nn.Linear default (uniform +-1/sqrt(fan_in)), fp32."""
    sizes = [input_size] + list(hidden_sizes) + [num_classes]
    params = []
    for i in range(len(sizes) - 1):
        fan_in, fan_out = sizes[i], sizes[i + 1]
        key, kw, kb = jax.random.split(key, 3)
        bound = 1.0 / math.sqrt(fan_in)
        w = jax.random.uniform(kw, (fan_in, fan_out), jnp.float32, -bound, bound)
        b = jax.random.uniform(kb, (1, fan_out), jnp.float32, -bound, bound)
        params.append((w, b))
    return params


def reference_forward(x_nchw, params):
    """Plain-JAX reference with the same bf16-input / fp32-accumulate casts."""
    h = x_nchw.reshape(x_nchw.shape[0], -1).astype(jnp.bfloat16)
    n = len(params)
    for i, (w, b) in enumerate(params):
        acc = jnp.dot(h, w.astype(jnp.bfloat16),
                      preferred_element_type=jnp.float32)
        b = b.reshape(1, -1).astype(jnp.bfloat16)
        if i < n - 1:
            h = jnp.maximum(acc.astype(jnp.bfloat16) + b, 0)
        else:
            h = (acc + b).astype(jnp.bfloat16).astype(jnp.float32)
    return h


if __name__ == "__main__":
    key = jax.random.PRNGKey(0)
    key, kx = jax.random.split(key)

    # Small MNIST-like batch in NCHW layout: (B=2, C=1, H=28, W=28) -> 784 features.
    x = jax.random.normal(kx, (2, 1, 28, 28), jnp.float32)
    params = init_params(key)

    fwd = jax.jit(base_network_forward)
    out = jax.block_until_ready(fwd(x, params))

    ref = reference_forward(x, params)
    assert out.shape == (2, 10), out.shape
    assert jnp.allclose(out, ref, atol=2e-2, rtol=2e-2), "mismatch vs reference"

    print("KERNEL_OK")
</pallas_src>

<mosaic_0001>
module attributes {stable_mosaic.version = 11 : i64} {
  func.func @_mlp_kernel(%arg0: i32, %arg1: memref<16x896xbf16, #tpu.memory_space<vmem>>, %arg2: memref<896x512xbf16, #tpu.memory_space<vmem>>, %arg3: memref<1x512xbf16, #tpu.memory_space<vmem>>, %arg4: memref<512x256xbf16, #tpu.memory_space<vmem>>, %arg5: memref<1x256xbf16, #tpu.memory_space<vmem>>, %arg6: memref<256x256xbf16, #tpu.memory_space<vmem>>, %arg7: memref<1x256xbf16, #tpu.memory_space<vmem>>, %arg8: memref<256x128xbf16, #tpu.memory_space<vmem>>, %arg9: memref<1x128xbf16, #tpu.memory_space<vmem>>, %arg10: memref<128x128xbf16, #tpu.memory_space<vmem>>, %arg11: memref<1x128xbf16, #tpu.memory_space<vmem>>, %arg12: memref<16x128xbf16, #tpu.memory_space<vmem>>) attributes {dimension_semantics = [#tpu.dimension_semantics<parallel>], iteration_bounds = array<i64: 1>, scalar_prefetch = 0 : i64, scratch_operands = 0 : i64, tpu.core_type = #tpu.core_type<tc>, window_params = [{transform_indices = @transform_0, window_bounds = array<i64: 16, 896>}, {pipeline_mode = #tpu.pipeline_mode<synchronous>, transform_indices = @transform_1, window_bounds = array<i64: 896, 512>}, {pipeline_mode = #tpu.pipeline_mode<synchronous>, transform_indices = @transform_2, window_bounds = array<i64: 1, 512>}, {pipeline_mode = #tpu.pipeline_mode<synchronous>, transform_indices = @transform_3, window_bounds = array<i64: 512, 256>}, {pipeline_mode = #tpu.pipeline_mode<synchronous>, transform_indices = @transform_4, window_bounds = array<i64: 1, 256>}, {pipeline_mode = #tpu.pipeline_mode<synchronous>, transform_indices = @transform_5, window_bounds = array<i64: 256, 256>}, {pipeline_mode = #tpu.pipeline_mode<synchronous>, transform_indices = @transform_6, window_bounds = array<i64: 1, 256>}, {pipeline_mode = #tpu.pipeline_mode<synchronous>, transform_indices = @transform_7, window_bounds = array<i64: 256, 128>}, {pipeline_mode = #tpu.pipeline_mode<synchronous>, transform_indices = @transform_8, window_bounds = array<i64: 1, 128>}, {pipeline_mode = #tpu.pipeline_mode<synchronous>, transform_indices = @transform_9, window_bounds = array<i64: 128, 128>}, {pipeline_mode = #tpu.pipeline_mode<synchronous>, transform_indices = @transform_10, window_bounds = array<i64: 1, 128>}, {transform_indices = @transform_11, window_bounds = array<i64: 16, 128>}]} {
    %c0 = arith.constant 0 : index
    %c0_0 = arith.constant 0 : index
    %0 = vector.load %arg1[%c0, %c0_0] : memref<16x896xbf16, #tpu.memory_space<vmem>>, vector<16x896xbf16>
    %c0_1 = arith.constant 0 : index
    %c0_2 = arith.constant 0 : index
    %1 = vector.load %arg2[%c0_1, %c0_2] : memref<896x512xbf16, #tpu.memory_space<vmem>>, vector<896x512xbf16>
    %cst = arith.constant dense<0.000000e+00> : vector<16x512xf32>
    %2 = tpu.matmul %0, %1, %cst {dimension_numbers = #tpu.dot_dimension_numbers<[1], [0], [0], [1], [0, 0, 1, 1], [], []>} : vector<16x896xbf16>, vector<896x512xbf16>, vector<16x512xf32> -> vector<16x512xf32>
    %3 = arith.truncf %2 : vector<16x512xf32> to vector<16x512xbf16>
    %c0_3 = arith.constant 0 : index
    %c0_4 = arith.constant 0 : index
    %4 = vector.load %arg3[%c0_3, %c0_4] : memref<1x512xbf16, #tpu.memory_space<vmem>>, vector<1x512xbf16>
    %5 = vector.broadcast %4 : vector<1x512xbf16> to vector<16x512xbf16>
    %6 = arith.addf %3, %5 : vector<16x512xbf16>
    %cst_5 = arith.constant 0.000000e+00 : bf16
    %7 = vector.broadcast %cst_5 : bf16 to vector<16x512xbf16>
    %8 = arith.maximumf %6, %7 : vector<16x512xbf16>
    %c0_6 = arith.constant 0 : index
    %c0_7 = arith.constant 0 : index
    %9 = vector.load %arg4[%c0_6, %c0_7] : memref<512x256xbf16, #tpu.memory_space<vmem>>, vector<512x256xbf16>
    %cst_8 = arith.constant dense<0.000000e+00> : vector<16x256xf32>
    %10 = tpu.matmul %8, %9, %cst_8 {dimension_numbers = #tpu.dot_dimension_numbers<[1], [0], [0], [1], [0, 0, 1, 1], [], []>} : vector<16x512xbf16>, vector<512x256xbf16>, vector<16x256xf32> -> vector<16x256xf32>
    %11 = arith.truncf %10 : vector<16x256xf32> to vector<16x256xbf16>
    %c0_9 = arith.constant 0 : index
    %c0_10 = arith.constant 0 : index
    %12 = vector.load %arg5[%c0_9, %c0_10] : memref<1x256xbf16, #tpu.memory_space<vmem>>, vector<1x256xbf16>
    %13 = vector.broadcast %12 : vector<1x256xbf16> to vector<16x256xbf16>
    %14 = arith.addf %11, %13 : vector<16x256xbf16>
    %cst_11 = arith.constant 0.000000e+00 : bf16
    %15 = vector.broadcast %cst_11 : bf16 to vector<16x256xbf16>
    %16 = arith.maximumf %14, %15 : vector<16x256xbf16>
    %c0_12 = arith.constant 0 : index
    %c0_13 = arith.constant 0 : index
    %17 = vector.load %arg6[%c0_12, %c0_13] : memref<256x256xbf16, #tpu.memory_space<vmem>>, vector<256x256xbf16>
    %cst_14 = arith.constant dense<0.000000e+00> : vector<16x256xf32>
    %18 = tpu.matmul %16, %17, %cst_14 {dimension_numbers = #tpu.dot_dimension_numbers<[1], [0], [0], [1], [0, 0, 1, 1], [], []>} : vector<16x256xbf16>, vector<256x256xbf16>, vector<16x256xf32> -> vector<16x256xf32>
    %19 = arith.truncf %18 : vector<16x256xf32> to vector<16x256xbf16>
    %c0_15 = arith.constant 0 : index
    %c0_16 = arith.constant 0 : index
    %20 = vector.load %arg7[%c0_15, %c0_16] : memref<1x256xbf16, #tpu.memory_space<vmem>>, vector<1x256xbf16>
    %21 = vector.broadcast %20 : vector<1x256xbf16> to vector<16x256xbf16>
    %22 = arith.addf %19, %21 : vector<16x256xbf16>
    %cst_17 = arith.constant 0.000000e+00 : bf16
    %23 = vector.broadcast %cst_17 : bf16 to vector<16x256xbf16>
    %24 = arith.maximumf %22, %23 : vector<16x256xbf16>
    %c0_18 = arith.constant 0 : index
    %c0_19 = arith.constant 0 : index
    %25 = vector.load %arg8[%c0_18, %c0_19] : memref<256x128xbf16, #tpu.memory_space<vmem>>, vector<256x128xbf16>
    %cst_20 = arith.constant dense<0.000000e+00> : vector<16x128xf32>
    %26 = tpu.matmul %24, %25, %cst_20 {dimension_numbers = #tpu.dot_dimension_numbers<[1], [0], [0], [1], [0, 0, 1, 1], [], []>} : vector<16x256xbf16>, vector<256x128xbf16>, vector<16x128xf32> -> vector<16x128xf32>
    %27 = arith.truncf %26 : vector<16x128xf32> to vector<16x128xbf16>
    %c0_21 = arith.constant 0 : index
    %c0_22 = arith.constant 0 : index
    %28 = vector.load %arg9[%c0_21, %c0_22] : memref<1x128xbf16, #tpu.memory_space<vmem>>, vector<1x128xbf16>
    %29 = vector.broadcast %28 : vector<1x128xbf16> to vector<16x128xbf16>
    %30 = arith.addf %27, %29 : vector<16x128xbf16>
    %cst_23 = arith.constant 0.000000e+00 : bf16
    %31 = vector.broadcast %cst_23 : bf16 to vector<16x128xbf16>
    %32 = arith.maximumf %30, %31 : vector<16x128xbf16>
    %c0_24 = arith.constant 0 : index
    %c0_25 = arith.constant 0 : index
    %33 = vector.load %arg10[%c0_24, %c0_25] : memref<128x128xbf16, #tpu.memory_space<vmem>>, vector<128x128xbf16>
    %cst_26 = arith.constant dense<0.000000e+00> : vector<16x128xf32>
    %34 = tpu.matmul %32, %33, %cst_26 {dimension_numbers = #tpu.dot_dimension_numbers<[1], [0], [0], [1], [0, 0, 1, 1], [], []>} : vector<16x128xbf16>, vector<128x128xbf16>, vector<16x128xf32> -> vector<16x128xf32>
    %c0_27 = arith.constant 0 : index
    %c0_28 = arith.constant 0 : index
    %35 = vector.load %arg11[%c0_27, %c0_28] : memref<1x128xbf16, #tpu.memory_space<vmem>>, vector<1x128xbf16>
    %36 = arith.extf %35 : vector<1x128xbf16> to vector<1x128xf32>
    %37 = vector.broadcast %36 : vector<1x128xf32> to vector<16x128xf32>
    %38 = arith.addf %34, %37 : vector<16x128xf32>
    %39 = arith.truncf %38 : vector<16x128xf32> to vector<16x128xbf16>
    %c0_29 = arith.constant 0 : index
    %c0_30 = arith.constant 0 : index
    %40 = vector.load %arg12[%c0_29, %c0_30] : memref<16x128xbf16, #tpu.memory_space<vmem>>, vector<16x128xbf16>
    tpu.vector_store %arg12[%c0_29, %c0_30], %39 {strides = array<i32>} : memref<16x128xbf16, #tpu.memory_space<vmem>>, vector<16x128xbf16>,
    return
  }
  func.func @transform_0(%arg0: i32) -> (i32, i32) {
    %c0_i32 = arith.constant 0 : i32
    %c0_i32_0 = arith.constant 0 : i32
    return %arg0, %c0_i32 : i32, i32
  }
  func.func @transform_1(%arg0: i32) -> (i32, i32) {
    %c0_i32 = arith.constant 0 : i32
    %c0_i32_0 = arith.constant 0 : i32
    %c0_i32_1 = arith.constant 0 : i32
    return %c0_i32, %c0_i32_0 : i32, i32
  }
  func.func @transform_2(%arg0: i32) -> (i32, i32) {
    %c0_i32 = arith.constant 0 : i32
    %c0_i32_0 = arith.constant 0 : i32
    %c0_i32_1 = arith.constant 0 : i32
    return %c0_i32, %c0_i32_0 : i32, i32
  }
  func.func @transform_3(%arg0: i32) -> (i32, i32) {
    %c0_i32 = arith.constant 0 : i32
    %c0_i32_0 = arith.constant 0 : i32
    %c0_i32_1 = arith.constant 0 : i32
    return %c0_i32, %c0_i32_0 : i32, i32
  }
  func.func @transform_4(%arg0: i32) -> (i32, i32) {
    %c0_i32 = arith.constant 0 : i32
    %c0_i32_0 = arith.constant 0 : i32
    %c0_i32_1 = arith.constant 0 : i32
    return %c0_i32, %c0_i32_0 : i32, i32
  }
  func.func @transform_5(%arg0: i32) -> (i32, i32) {
    %c0_i32 = arith.constant 0 : i32
    %c0_i32_0 = arith.constant 0 : i32
    %c0_i32_1 = arith.constant 0 : i32
    return %c0_i32, %c0_i32_0 : i32, i32
  }
  func.func @transform_6(%arg0: i32) -> (i32, i32) {
    %c0_i32 = arith.constant 0 : i32
    %c0_i32_0 = arith.constant 0 : i32
    %c0_i32_1 = arith.constant 0 : i32
    return %c0_i32, %c0_i32_0 : i32, i32
  }
  func.func @transform_7(%arg0: i32) -> (i32, i32) {
    %c0_i32 = arith.constant 0 : i32
    %c0_i32_0 = arith.constant 0 : i32
    %c0_i32_1 = arith.constant 0 : i32
    return %c0_i32, %c0_i32_0 : i32, i32
  }
  func.func @transform_8(%arg0: i32) -> (i32, i32) {
    %c0_i32 = arith.constant 0 : i32
    %c0_i32_0 = arith.constant 0 : i32
    %c0_i32_1 = arith.constant 0 : i32
    return %c0_i32, %c0_i32_0 : i32, i32
  }
  func.func @transform_9(%arg0: i32) -> (i32, i32) {
    %c0_i32 = arith.constant 0 : i32
    %c0_i32_0 = arith.constant 0 : i32
    %c0_i32_1 = arith.constant 0 : i32
    return %c0_i32, %c0_i32_0 : i32, i32
  }
  func.func @transform_10(%arg0: i32) -> (i32, i32) {
    %c0_i32 = arith.constant 0 : i32
    %c0_i32_0 = arith.constant 0 : i32
    %c0_i32_1 = arith.constant 0 : i32
    return %c0_i32, %c0_i32_0 : i32, i32
  }
  func.func @transform_11(%arg0: i32) -> (i32, i32) {
    %c0_i32 = arith.constant 0 : i32
    %c0_i32_0 = arith.constant 0 : i32
    return %arg0, %c0_i32 : i32, i32
  }
}

</mosaic_0001>

<bundles_post_ra>
// kernel: base_network_forward.1
= control target key start
LH: loop header
LB: loop body
LE: loop exit
PB: predicated region body
PF: predicated region fallthrough
CT: control target
= control target key end

     0   :  { %s6983_s1 = inlined_call_operand.vmem [shape: bf16[896,512], index: 1, kind: input, shape index: {}]   ;;  %s6984_s0 = inlined_call_operand.vmem [shape: bf16[16,896], index: 0, kind: input, shape index: {}]   ;;  %s6985_s3 = inlined_call_operand.vmem [shape: bf16[512,256], index: 3, kind: input, shape index: {}]   ;;  %s6986_s2 = inlined_call_operand.vmem [shape: bf16[1,512], index: 2, kind: input, shape index: {}]   ;;  %s6987_s4 = inlined_call_operand.vmem [shape: bf16[1,256], index: 4, kind: input, shape index: {}]   ;;  %s6988_s5 = inlined_call_operand.vmem [shape: bf16[256,256], index: 5, kind: input, shape index: {}]   ;;  %s6989_s6 = inlined_call_operand.vmem [shape: bf16[1,256], index: 6, kind: input, shape index: {}]   ;;  %s6990_s7 = inlined_call_operand.vmem [shape: bf16[256,128], index: 7, kind: input, shape index: {}]   ;;  %s6991_s9 = inlined_call_operand.vmem [shape: bf16[128,128], index: 9, kind: input, shape index: {}]   ;;  %s6992_s8 = inlined_call_operand.vmem [shape: bf16[1,128], index: 8, kind: input, shape index: {}]   ;;  %s6993_s10 = inlined_call_operand.vmem [shape: bf16[1,128], index: 10, kind: input, shape index: {}]   ;;  %s6994_s11 = inlined_call_operand.vmem [shape: bf16[16,128], index: 11, kind: output, shape index: {}]  }
   0x1   :  { %v3105_v0 = vld [vmem:[%s6983_s1 + $0xe0] sm:$0xf]  ;;  %v4404_v1 = vld [vmem:[%s6983_s1 + $0xec] sm:$0xf0] }
   0x2   :  { %v3233_v2 = vld [vmem:[%s6983_s1 + $0x1e0] sm:$0xf]  ;;  %v3106_v3 = vor.u32 %v4404_v1, %v3105_v0  ;;  %v4436_v4 = vld [vmem:[%s6983_s1 + $0x1ec] sm:$0xf0] }
   0x3   :  { %v3361_v5 = vld [vmem:[%s6983_s1 + $0x2e0] sm:$0xf]  ;;  %v4468_v6 = vld [vmem:[%s6983_s1 + $0x2ec] sm:$0xf0]  ;;  %v3234_v7 = vor.u32 %v4436_v4, %v3233_v2 }
   0x4   :  { %v3362_v8 = vor.u32 %v4468_v6, %v3361_v5  ;;  %v3489_v9 = vld [vmem:[%s6983_s1 + $0x3e0] sm:$0xf]  ;;  %v4500_v10 = vld [vmem:[%s6983_s1 + $0x3ec] sm:$0xf0]  ;;  %1426 = vmatpush.bf16.msra.mxu0 %v3106_v3 }
   0x5   :  { %v3089_v11 = vld [vmem:[%s6983_s1 + $0xc0] sm:$0xf]  ;;  %v3490_v12 = vor.u32 %v4500_v10, %v3489_v9  ;;  %v4400_v13 = vld [vmem:[%s6983_s1 + $0xcc] sm:$0xf0]  ;;  %1440 = vmatpush.bf16.msra.mxu1 %v3234_v7 }
   0x6   :  { %v3217_v14 = vld [vmem:[%s6983_s1 + $0x1c0] sm:$0xf]  ;;  %v4432_v15 = vld [vmem:[%s6983_s1 + $0x1cc] sm:$0xf0]  ;;  %1454 = vmatpush.bf16.msra.mxu2 %v3362_v8  ;;  %v3090_v16 = vor.u32 %v4400_v13, %v3089_v11 }
   0x7   :  { %v3218_v17 = vor.u32 %v4432_v15, %v3217_v14  ;;  %v3345_v18 = vld [vmem:[%s6983_s1 + $0x2c0] sm:$0xf]  ;;  %v4464_v19 = vld [vmem:[%s6983_s1 + $0x2cc] sm:$0xf0]  ;;  %1468 = vmatpush.bf16.msra.mxu3 %v3490_v12 }
   0x8   :  { %v3473_v20 = vld [vmem:[%s6983_s1 + $0x3c0] sm:$0xf]  ;;  %v3346_v21 = vor.u32 %v4464_v19, %v3345_v18  ;;  %v4496_v22 = vld [vmem:[%s6983_s1 + $0x3cc] sm:$0xf0]  ;;  %1427 = vmatpush.bf16.msra.mxu0 %v3090_v16 }
   0x9   :  { %v3073_v23 = vld [vmem:[%s6983_s1 + $0xa0] sm:$0xf]  ;;  %v4396_v24 = vld [vmem:[%s6983_s1 + $0xac] sm:$0xf0]  ;;  %v3474_v25 = vor.u32 %v4496_v22, %v3473_v20  ;;  %1441 = vmatpush.bf16.msra.mxu1 %v3218_v17 }
   0xa   :  { %v3201_v26 = vld [vmem:[%s6983_s1 + $0x1a0] sm:$0xf]  ;;  %v4428_v27 = vld [vmem:[%s6983_s1 + $0x1ac] sm:$0xf0]  ;;  %v3074_v29 = vor.u32 %v4396_v24, %v3073_v23  ;;  %1455 = vmatpush.bf16.msra.mxu2 %v3346_v21 }
   0xb   :  { %v3329_v28 = vld [vmem:[%s6983_s1 + $0x2a0] sm:$0xf]  ;;  %v4460_v30 = vld [vmem:[%s6983_s1 + $0x2ac] sm:$0xf0]  ;;  %v3202_v33 = vor.u32 %v4428_v27, %v3201_v26  ;;  %1469 = vmatpush.bf16.msra.mxu3 %v3474_v25 }
   0xc   :  { %v3457_v31 = vld [vmem:[%s6983_s1 + $0x3a0] sm:$0xf]  ;;  %v4492_v32 = vld [vmem:[%s6983_s1 + $0x3ac] sm:$0xf0]  ;;  %v3330_v34 = vor.u32 %v4460_v30, %v3329_v28  ;;  %1428 = vmatpush.bf16.msra.mxu0 %v3074_v29 }
   0xd   :  { %v3057_v35 = vld [vmem:[%s6983_s1 + $0x80] sm:$0xf]  ;;  %v4392_v36 = vld [vmem:[%s6983_s1 + $0x8c] sm:$0xf0]  ;;  %v3458_v38 = vor.u32 %v4492_v32, %v3457_v31  ;;  %1442 = vmatpush.bf16.msra.mxu1 %v3202_v33 }
   0xe   :  { %v3185_v37 = vld [vmem:[%s6983_s1 + $0x180] sm:$0xf]  ;;  %v4424_v39 = vld [vmem:[%s6983_s1 + $0x18c] sm:$0xf0]  ;;  %v3058_v44 = vor.u32 %v4392_v36, %v3057_v35  ;;  %1456 = vmatpush.bf16.msra.mxu2 %v3330_v34 }
   0xf   :  { %v3313_v40 = vld [vmem:[%s6983_s1 + $0x280] sm:$0xf]  ;;  %v4456_v41 = vld [vmem:[%s6983_s1 + $0x28c] sm:$0xf0]  ;;  %v3186_v45 = vor.u32 %v4424_v39, %v3185_v37  ;;  %1470 = vmatpush.bf16.msra.mxu3 %v3458_v38  ;;  %v4402_v37 = vld [vmem:[%s6983_s1 + $0xe4] sm:$0xf] }
  0x10   :  { %v3441_v42 = vld [vmem:[%s6983_s1 + $0x380] sm:$0xf]  ;;  %v4488_v43 = vld [vmem:[%s6983_s1 + $0x38c] sm:$0xf0]  ;;  %v3314_v46 = vor.u32 %v4456_v41, %v3313_v40  ;;  %1429 = vmatpush.bf16.msra.mxu0 %v3058_v44  ;;  %v3107_v38 = vld [vmem:[%s6983_s1 + $0xf0] sm:$0xf0] }
  0x11   :  { %v3041_v47 = vld [vmem:[%s6983_s1 + $0x60] sm:$0xf]  ;;  %v4388_v48 = vld [vmem:[%s6983_s1 + $0x6c] sm:$0xf0]  ;;  %v3442_v50 = vor.u32 %v4488_v43, %v3441_v42  ;;  %1443 = vmatpush.bf16.msra.mxu1 %v3186_v45 }
  0x12   :  { %v3169_v49 = vld [vmem:[%s6983_s1 + $0x160] sm:$0xf]  ;;  %v4420_v51 = vld [vmem:[%s6983_s1 + $0x16c] sm:$0xf0]  ;;  %v3042_v56 = vor.u32 %v4388_v48, %v3041_v47  ;;  %1457 = vmatpush.bf16.msra.mxu2 %v3314_v46  ;;  %v3110_v48 = vor.u32 %v4402_v37, %v3107_v38 }
  0x13   :  { %v3297_v52 = vld [vmem:[%s6983_s1 + $0x260] sm:$0xf]  ;;  %v4452_v53 = vld [vmem:[%s6983_s1 + $0x26c] sm:$0xf0]  ;;  %v3170_v57 = vor.u32 %v4420_v51, %v3169_v49  ;;  %1471 = vmatpush.bf16.msra.mxu3 %v3442_v50  ;;  %v4398_v50 = vld [vmem:[%s6983_s1 + $0xc4] sm:$0xf] }
  0x14   :  { %v3425_v54 = vld [vmem:[%s6983_s1 + $0x360] sm:$0xf]  ;;  %v4484_v55 = vld [vmem:[%s6983_s1 + $0x36c] sm:$0xf0]  ;;  %v3298_v58 = vor.u32 %v4452_v53, %v3297_v52  ;;  %1430 = vmatpush.bf16.msra.mxu0 %v3042_v56  ;;  %v3091_v51 = vld [vmem:[%s6983_s1 + $0xd0] sm:$0xf0] }
  0x15   :  { %v3025_v59 = vld [vmem:[%s6983_s1 + $0x40] sm:$0xf]  ;;  %v4384_v60 = vld [vmem:[%s6983_s1 + $0x4c] sm:$0xf0]  ;;  %v3426_v62 = vor.u32 %v4484_v55, %v3425_v54  ;;  %1444 = vmatpush.bf16.msra.mxu1 %v3170_v57  ;;  %v4370_v53 = vld [vmem:[%s6984_s0 + $0x18] sm:$0xf0] }
  0x16   :  { %v3153_v61 = vld [vmem:[%s6983_s1 + $0x140] sm:$0xf]  ;;  %v4416_v63 = vld [vmem:[%s6983_s1 + $0x14c] sm:$0xf0]  ;;  %v3026_v4 = vor.u32 %v4384_v60, %v3025_v59  ;;  %1458 = vmatpush.bf16.msra.mxu2 %v3298_v58  ;;  %v2973_v54 = vld [vmem:[%s6984_s0 + $0x8] sm:$0xf] }
  0x17   :  { %v3281_v0 = vld [vmem:[%s6983_s1 + $0x240] sm:$0xf]  ;;  %v4448_v1 = vld [vmem:[%s6983_s1 + $0x24c] sm:$0xf0]  ;;  %v3154_v5 = vor.u32 %v4416_v63, %v3153_v61  ;;  %1472 = vmatpush.bf16.msra.mxu3 %v3426_v62  ;;  %v4371_v58 = vld [vmem:[%s6984_s0 + $0x20] sm:$0xf0] }
  0x18   :  { %v3409_v2 = vld [vmem:[%s6983_s1 + $0x340] sm:$0xf]  ;;  %v4480_v3 = vld [vmem:[%s6983_s1 + $0x34c] sm:$0xf0]  ;;  %v3282_v6 = vor.u32 %v4448_v1, %v3281_v0  ;;  %1431 = vmatpush.bf16.msra.mxu0 %v3026_v4  ;;  %v5049_v0 = vor.u32 %v4371_v58, %v2973_v54  ;;  %v3094_v1 = vor.u32 %v4398_v50, %v3091_v51  ;;  %v4394_v4 = vld [vmem:[%s6983_s1 + $0xa4] sm:$0xf] }
  0x19   :  { %v3009_v7 = vld [vmem:[%s6983_s1 + $0x20] sm:$0xf]  ;;  %v4380_v8 = vld [vmem:[%s6983_s1 + $0x2c] sm:$0xf0]  ;;  %v3410_v10 = vor.u32 %v4480_v3, %v3409_v2  ;;  %1445 = vmatpush.bf16.msra.mxu1 %v3154_v5  ;;  %v3075_v5 = vld [vmem:[%s6983_s1 + $0xb0] sm:$0xf0] }
  0x1a   :  { %v3137_v9 = vld [vmem:[%s6983_s1 + $0x120] sm:$0xf]  ;;  %v4412_v11 = vld [vmem:[%s6983_s1 + $0x12c] sm:$0xf0]  ;;  %v3010_v16 = vor.u32 %v4380_v8, %v3009_v7  ;;  %1459 = vmatpush.bf16.msra.mxu2 %v3282_v6  ;;  %v4367_v6 = vld [vmem:[%s6984_s0 + $0x4] sm:$0xf] }
  0x1b   :  { %v3265_v12 = vld [vmem:[%s6983_s1 + $0x220] sm:$0xf]  ;;  %v4444_v13 = vld [vmem:[%s6983_s1 + $0x22c] sm:$0xf0]  ;;  %v3138_v19 = vor.u32 %v4412_v11, %v3137_v9  ;;  %1473 = vmatpush.bf16.msra.mxu3 %v3410_v10 }
  0x1c   :  { %v3393_v14 = vld [vmem:[%s6983_s1 + $0x320] sm:$0xf]  ;;  %v4476_v15 = vld [vmem:[%s6983_s1 + $0x32c] sm:$0xf0]  ;;  %v3266_v20 = vor.u32 %v4444_v13, %v3265_v12  ;;  %1432 = vmatpush.bf16.msra.mxu0 %v3010_v16 }
  0x1d   :  { %v2993_v17 = vld [vmem:[%s6983_s1] sm:$0xf]  ;;  %v4376_v18 = vld [vmem:[%s6983_s1 + $0xc] sm:$0xf0]  ;;  %v3394_v24 = vor.u32 %v4476_v15, %v3393_v14  ;;  %1446 = vmatpush.bf16.msra.mxu1 %v3138_v19  ;;  %v4368_v19 = vld [vmem:[%s6984_s0 + $0xc] sm:$0xf] }
  0x1e   :  { %v3121_v21 = vld [vmem:[%s6983_s1 + $0x100] sm:$0xf]  ;;  %v4408_v22 = vld [vmem:[%s6983_s1 + $0x10c] sm:$0xf0]  ;;  %v2994_v31 = vor.u32 %v4376_v18, %v2993_v17  ;;  %1460 = vmatpush.bf16.msra.mxu2 %v3266_v20  ;;  %v3078_v17 = vor.u32 %v4394_v4, %v3075_v5  ;;  %v2975_v20 = vld [vmem:[%s6984_s0 + $0x24] sm:$0xf0] }
  0x1f   :  { %v3249_v23 = vld [vmem:[%s6983_s1 + $0x200] sm:$0xf]  ;;  %v4440_v25 = vld [vmem:[%s6983_s1 + $0x20c] sm:$0xf0]  ;;  %v3122_v35 = vor.u32 %v4408_v22, %v3121_v21  ;;  %1474 = vmatpush.bf16.msra.mxu3 %v3394_v24  ;;  %v4390_v21 = vld [vmem:[%s6983_s1 + $0x84] sm:$0xf] }
  0x20   :  { %v3377_v26 = vld [vmem:[%s6983_s1 + $0x300] sm:$0xf]  ;;  %v4472_v27 = vld [vmem:[%s6983_s1 + $0x30c] sm:$0xf0]  ;;  %v3250_v36 = vor.u32 %v4440_v25, %v3249_v23  ;;  %1433 = vmatpush.bf16.msra.mxu0 %v2994_v31  ;;  %v3059_v22 = vld [vmem:[%s6983_s1 + $0x90] sm:$0xf0]  ;;  %v5104_v23 = vor.u32 %v4368_v19, %v2975_v20 }
  0x21   :  { %v3617_v28 = vld [vmem:[%s6983_s1 + $0x4e0] sm:$0xf]  ;;  %v4532_v29 = vld [vmem:[%s6983_s1 + $0x4ec] sm:$0xf0]  ;;  %v3378_v39 = vor.u32 %v4472_v27, %v3377_v26  ;;  %1447 = vmatpush.bf16.msra.mxu1 %v3122_v35  ;;  %v3043_v35 = vld [vmem:[%s6983_s1 + $0x70] sm:$0xf0] }
  0x22   :  { %v3745_v30 = vld [vmem:[%s6983_s1 + $0x5e0] sm:$0xf]  ;;  %v4564_v32 = vld [vmem:[%s6983_s1 + $0x5ec] sm:$0xf0]  ;;  %v3618_v40 = vor.u32 %v4532_v29, %v3617_v28  ;;  %1461 = vmatpush.bf16.msra.mxu2 %v3250_v36  ;;  %v3619_v19 = vld [vmem:[%s6983_s1 + $0x4f0] sm:$0xf0] }
  0x23   :  { %v3873_v33 = vld [vmem:[%s6983_s1 + $0x6e0] sm:$0xf]  ;;  %v4596_v34 = vld [vmem:[%s6983_s1 + $0x6ec] sm:$0xf0]  ;;  %v3746_v43 = vor.u32 %v4564_v32, %v3745_v30  ;;  %1475 = vmatpush.bf16.msra.mxu3 %v3378_v39  ;;  %v3062_v30 = vor.u32 %v4390_v21, %v3059_v22 }
  0x24   :  { %v3601_v41 = vld [vmem:[%s6983_s1 + $0x4c0] sm:$0xf]  ;;  %v4528_v42 = vld [vmem:[%s6983_s1 + $0x4cc] sm:$0xf0]  ;;  %v3874_v44 = vor.u32 %v4596_v34, %v3873_v33  ;;  %1482 = vmatpush.bf16.msrb.mxu0 %v3618_v40  ;;  %v4386_v34 = vld [vmem:[%s6983_s1 + $0x64] sm:$0xf] }
  0x25   :  { %v3729_v45 = vld [vmem:[%s6983_s1 + $0x5c0] sm:$0xf]  ;;  %v4560_v46 = vld [vmem:[%s6983_s1 + $0x5cc] sm:$0xf0]  ;;  %v3602_v55 = vor.u32 %v4528_v42, %v3601_v41  ;;  %1496 = vmatpush.bf16.msrb.mxu1 %v3746_v43  ;;  %1462 = vmatmul.bf16.vlgmr.msra.gmra.mxu2 %v5049_v0  ;;  %v3046_v42 = vor.u32 %v4386_v34, %v3043_v35  ;;  %v3219_v34 = vld [vmem:[%s6983_s1 + $0x1d0] sm:$0xf0] }
  0x26   :  { %v3857_v47 = vld [vmem:[%s6983_s1 + $0x6c0] sm:$0xf]  ;;  %v4592_v49 = vld [vmem:[%s6983_s1 + $0x6cc] sm:$0xf0]  ;;  %1510 = vmatpush.bf16.msrb.mxu2 %v3874_v44  ;;  %v3730_v59 = vor.u32 %v4560_v46, %v3729_v45  ;;  %1476 = vmatmul.bf16.vlgmr.msra.gmra.mxu3 %v5104_v23  ;;  %v4382_v46 = vld [vmem:[%s6983_s1 + $0x44] sm:$0xf] }
  0x27   :  { %v2965_v52 = vld [vmem:[%s6984_s0] sm:$0xf]  ;;  %v3858_v60 = vor.u32 %v4592_v49, %v3857_v47  ;;  %v4524_v61 = vld [vmem:[%s6983_s1 + $0x4ac] sm:$0xf0]  ;;  %1524 = vmatpush.bf16.msrb.mxu3 %v3110_v48  ;;  %v3027_v47 = vld [vmem:[%s6983_s1 + $0x50] sm:$0xf0] }
  0x28   :  { %v3585_v56 = vld [vmem:[%s6983_s1 + $0x4a0] sm:$0xf]  ;;  %v5035_v57 = vor.u32 %v4370_v53, %v2965_v52  ;;  %v4556_v63 = vld [vmem:[%s6983_s1 + $0x5ac] sm:$0xf0]  ;;  %1483 = vmatpush.bf16.msrb.mxu0 %v3602_v55  ;;  %v3030_v54 = vor.u32 %v4382_v46, %v3027_v47  ;;  %v4462_v35 = vld [vmem:[%s6983_s1 + $0x2c4] sm:$0xf] }
  0x29   :  { %v3713_v62 = vld [vmem:[%s6983_s1 + $0x5a0] sm:$0xf]  ;;  %v4588_v3 = vld [vmem:[%s6983_s1 + $0x6ac] sm:$0xf0]  ;;  %v3586_v8 = vor.u32 %v4524_v61, %v3585_v56  ;;  %1497 = vmatpush.bf16.msrb.mxu1 %v3730_v59  ;;  %v4378_v59 = vld [vmem:[%s6983_s1 + $0x24] sm:$0xf] }
  0x2a   :  { %v3841_v2 = vld [vmem:[%s6983_s1 + $0x6a0] sm:$0xf]  ;;  %1434 = vmatmul.bf16.vlgmr.msra.gmra.mxu0 %v5035_v57  ;;  %v4520_v10 = vld [vmem:[%s6983_s1 + $0x48c] sm:$0xf0]  ;;  %1511 = vmatpush.bf16.msrb.mxu2 %v3858_v60  ;;  %v3714_v12 = vor.u32 %v4556_v63, %v3713_v62  ;;  %v3011_v60 = vld [vmem:[%s6983_s1 + $0x30] sm:$0xf0] }
  0x2b   :  { %v2967_v7 = vld [vmem:[%s6984_s0 + $0x1c] sm:$0xf0]  ;;  %v3842_v13 = vor.u32 %v4588_v3, %v3841_v2  ;;  %v4552_v15 = vld [vmem:[%s6983_s1 + $0x58c] sm:$0xf0]  ;;  %1525 = vmatpush.bf16.msrb.mxu3 %v3094_v1 }
  0x2c   :  { %v3569_v9 = vld [vmem:[%s6983_s1 + $0x480] sm:$0xf]  ;;  %v5077_v11 = vor.u32 %v4367_v6, %v2967_v7  ;;  %v4584_v18 = vld [vmem:[%s6983_s1 + $0x68c] sm:$0xf0]  ;;  %1484 = vmatpush.bf16.msrb.mxu0 %v3586_v8  ;;  %v4374_v7 = vld [vmem:[%s6983_s1 + $0x4] sm:$0xf]  ;;  %v3014_v8 = vor.u32 %v4378_v59, %v3011_v60 }
  0x2d   :  { %v3697_v14 = vld [vmem:[%s6983_s1 + $0x580] sm:$0xf]  ;;  %v3570_v24 = vor.u32 %v4520_v10, %v3569_v9  ;;  %1498 = vmatpush.bf16.msrb.mxu1 %v3714_v12  ;;  %v4516_v28 = vld [vmem:[%s6983_s1 + $0x46c] sm:$0xf0]  ;;  %v2995_v9 = vld [vmem:[%s6983_s1 + $0x10] sm:$0xf0] }
  0x2e   :  { %v3825_v16 = vld [vmem:[%s6983_s1 + $0x680] sm:$0xf]  ;;  %1448 = vmatmul.bf16.vlgmr.msra.gmra.mxu1 %v5077_v11  ;;  %1512 = vmatpush.bf16.msrb.mxu2 %v3842_v13  ;;  %v3698_v25 = vor.u32 %v4552_v15, %v3697_v14  ;;  %v4548_v31 = vld [vmem:[%s6983_s1 + $0x56c] sm:$0xf0]  ;;  %v4434_v10 = vld [vmem:[%s6983_s1 + $0x1e4] sm:$0xf] }
  0x2f   :  { %v3826_v26 = vor.u32 %v4584_v18, %v3825_v16  ;;  %v3553_v27 = vld [vmem:[%s6983_s1 + $0x460] sm:$0xf]  ;;  %1526 = vmatpush.bf16.msrb.mxu3 %v3078_v17  ;;  %v4580_v33 = vld [vmem:[%s6983_s1 + $0x66c] sm:$0xf0]  ;;  %v3235_v12 = vld [vmem:[%s6983_s1 + $0x1f0] sm:$0xf0] }
  0x30   :  { %v3681_v29 = vld [vmem:[%s6983_s1 + $0x560] sm:$0xf]  ;;  %1485 = vmatpush.bf16.msrb.mxu0 %v3570_v24  ;;  %v3554_v36 = vor.u32 %v4516_v28, %v3553_v27  ;;  %v4512_v40 = vld [vmem:[%s6983_s1 + $0x44c] sm:$0xf0]  ;;  %v4466_v13 = vld [vmem:[%s6983_s1 + $0x2e4] sm:$0xf]  ;;  %v3238_v27 = vor.u32 %v4434_v10, %v3235_v12 }
  0x31   :  { %v3809_v32 = vld [vmem:[%s6983_s1 + $0x660] sm:$0xf]  ;;  %1499 = vmatpush.bf16.msrb.mxu1 %v3698_v25  ;;  %v3682_v37 = vor.u32 %v4548_v31, %v3681_v29  ;;  %v4544_v43 = vld [vmem:[%s6983_s1 + $0x54c] sm:$0xf0]  ;;  %v3363_v14 = vld [vmem:[%s6983_s1 + $0x2f0] sm:$0xf0] }
  0x32   :  { %1513 = vmatpush.bf16.msrb.mxu2 %v3826_v26  ;;  %v3810_v38 = vor.u32 %v4580_v33, %v3809_v32  ;;  %v3537_v39 = vld [vmem:[%s6983_s1 + $0x440] sm:$0xf]  ;;  %v4576_v45 = vld [vmem:[%s6983_s1 + $0x64c] sm:$0xf0]  ;;  %v4498_v15 = vld [vmem:[%s6983_s1 + $0x3e4] sm:$0xf]  ;;  %v2998_v26 = vor.u32 %v4374_v7, %v2995_v9  ;;  %v3366_v31 = vor.u32 %v4466_v13, %v3363_v14 }
  0x33   :  { %v3665_v41 = vld [vmem:[%s6983_s1 + $0x540] sm:$0xf]  ;;  %1527 = vmatpush.bf16.msrb.mxu3 %v3062_v30  ;;  %v3538_v48 = vor.u32 %v4512_v40, %v3537_v39  ;;  %v4508_v52 = vld [vmem:[%s6983_s1 + $0x42c] sm:$0xf0]  ;;  %v3491_v17 = vld [vmem:[%s6983_s1 + $0x3f0] sm:$0xf0] }
  0x34   :  { %v3793_v44 = vld [vmem:[%s6983_s1 + $0x640] sm:$0xf]  ;;  %1486 = vmatpush.bf16.msrb.mxu0 %v3554_v36  ;;  %v3666_v49 = vor.u32 %v4544_v43, %v3665_v41  ;;  %v4540_v55 = vld [vmem:[%s6983_s1 + $0x52c] sm:$0xf0]  ;;  %v4530_v18 = vld [vmem:[%s6983_s1 + $0x4e4] sm:$0xf]  ;;  %v3494_v32 = vor.u32 %v4498_v15, %v3491_v17 }
  0x35   :  { %1500 = vmatpush.bf16.msrb.mxu1 %v3682_v37  ;;  %v3794_v50 = vor.u32 %v4576_v45, %v3793_v44  ;;  %v3521_v51 = vld [vmem:[%s6983_s1 + $0x420] sm:$0xf]  ;;  %v4572_v58 = vld [vmem:[%s6983_s1 + $0x62c] sm:$0xf0]  ;;  %v4372_v24 = vld [vmem:[%s6984_s0 + $0x28] sm:$0xf0]  ;;  %v3622_v36 = vor.u32 %v4530_v18, %v3619_v19 }
  0x36   :  { %1514 = vmatpush.bf16.msrb.mxu2 %v3810_v38  ;;  %v3649_v53 = vld [vmem:[%s6983_s1 + $0x520] sm:$0xf]  ;;  %v3522_v62 = vor.u32 %v4508_v52, %v3521_v51  ;;  %v4504_v63 = vld [vmem:[%s6983_s1 + $0x40c] sm:$0xf0]  ;;  %v2989_v25 = vld [vmem:[%s6984_s0 + $0x18] sm:$0xf] }
  0x37   :  { %1528 = vmatpush.bf16.msrb.mxu3 %v3046_v42  ;;  %v3777_v56 = vld [vmem:[%s6983_s1 + $0x620] sm:$0xf]  ;;  %v4536_v2 = vld [vmem:[%s6983_s1 + $0x50c] sm:$0xf0]  ;;  %v3650_v3 = vor.u32 %v4540_v55, %v3649_v53  ;;  %v4373_v28 = vld [vmem:[%s6984_s0 + $0x30] sm:$0xf0] }
  0x38   :  { %v3505_v61 = vld [vmem:[%s6983_s1 + $0x400] sm:$0xf]  ;;  %1487 = vmatpush.bf16.msrb.mxu0 %v3538_v48  ;;  %v3778_v4 = vor.u32 %v4572_v58, %v3777_v56  ;;  %v4568_v6 = vld [vmem:[%s6983_s1 + $0x60c] sm:$0xf0]  ;;  %v4369_v29 = vld [vmem:[%s6984_s0 + $0x14] sm:$0xf]  ;;  %v5265_v41 = vor.u32 %v4373_v28, %v2989_v25 }
  0x39   :  { %v3633_v1 = vld [vmem:[%s6983_s1 + $0x500] sm:$0xf]  ;;  %1501 = vmatpush.bf16.msrb.mxu1 %v3666_v49  ;;  %v3506_v16 = vor.u32 %v4504_v63, %v3505_v61  ;;  %v2981_v22 = vld [vmem:[%s6984_s0 + $0x10] sm:$0xf]  ;;  %v4430_v33 = vld [vmem:[%s6983_s1 + $0x1c4] sm:$0xf] }
  0x3a   :  { %1515 = vmatpush.bf16.msrb.mxu2 %v3794_v50  ;;  %v3761_v5 = vld [vmem:[%s6983_s1 + $0x600] sm:$0xf]  ;;  %v3634_v20 = vor.u32 %v4536_v2, %v3633_v1  ;;  %v2983_v30 = vld [vmem:[%s6984_s0 + $0x2c] sm:$0xf0]  ;;  %v5254_v37 = vor.u32 %v4372_v24, %v2981_v22  ;;  %v3347_v38 = vld [vmem:[%s6983_s1 + $0x2d0] sm:$0xf0]  ;;  %v3222_v45 = vor.u32 %v4430_v33, %v3219_v34 }
  0x3b   :  { %1529 = vmatpush.bf16.msrb.mxu3 %v3030_v54  ;;  %v3762_v21 = vor.u32 %v4568_v6, %v3761_v5  ;;  %v4494_v39 = vld [vmem:[%s6983_s1 + $0x3c4] sm:$0xf]  ;;  %v3475_v40 = vld [vmem:[%s6983_s1 + $0x3d0] sm:$0xf0]  ;;  %v5267_v42 = vor.u32 %v4369_v29, %v2983_v30  ;;  %v3350_v46 = vor.u32 %v4462_v35, %v3347_v38 }
  0x3c   :  { %1488 = vmatpush.bf16.msrb.mxu0 %v3522_v62  ;;  %v4526_v43 = vld [vmem:[%s6983_s1 + $0x4c4] sm:$0xf]  ;;  %v3603_v44 = vld [vmem:[%s6983_s1 + $0x4d0] sm:$0xf0]  ;;  %v3478_v47 = vor.u32 %v4494_v39, %v3475_v40 }
  0x3d   :  { %1502 = vmatpush.bf16.msrb.mxu1 %v3650_v3  ;;  %v4426_v48 = vld [vmem:[%s6983_s1 + $0x1a4] sm:$0xf]  ;;  %v3203_v49 = vld [vmem:[%s6983_s1 + $0x1b0] sm:$0xf0]  ;;  %v3606_v51 = vor.u32 %v4526_v43, %v3603_v44 }
  0x3e   :  { %1516 = vmatpush.bf16.msrb.mxu2 %v3778_v4  ;;  %v4458_v50 = vld [vmem:[%s6983_s1 + $0x2a4] sm:$0xf]  ;;  %v3331_v52 = vld [vmem:[%s6983_s1 + $0x2b0] sm:$0xf0]  ;;  %v3206_v58 = vor.u32 %v4426_v48, %v3203_v49 }
  0x3f   :  { %1530 = vmatpush.bf16.msrb.mxu3 %v3014_v8  ;;  %v4490_v53 = vld [vmem:[%s6983_s1 + $0x3a4] sm:$0xf]  ;;  %v3459_v54 = vld [vmem:[%s6983_s1 + $0x3b0] sm:$0xf0]  ;;  %v3334_v59 = vor.u32 %v4458_v50, %v3331_v52 }
  0x40   :  { %1489 = vmatpush.bf16.msrb.mxu0 %v3506_v16  ;;  %v4522_v55 = vld [vmem:[%s6983_s1 + $0x4a4] sm:$0xf]  ;;  %v3587_v56 = vld [vmem:[%s6983_s1 + $0x4b0] sm:$0xf0]  ;;  %v3462_v60 = vor.u32 %v4490_v53, %v3459_v54 }
  0x41   :  { %1503 = vmatpush.bf16.msrb.mxu1 %v3634_v20  ;;  %v4422_v61 = vld [vmem:[%s6983_s1 + $0x184] sm:$0xf]  ;;  %v3187_v62 = vld [vmem:[%s6983_s1 + $0x190] sm:$0xf0]  ;;  %v3590_v1 = vor.u32 %v4522_v55, %v3587_v56 }
  0x42   :  { %1517 = vmatpush.bf16.msrb.mxu2 %v3762_v21  ;;  %v4454_v63 = vld [vmem:[%s6983_s1 + $0x284] sm:$0xf]  ;;  %v3315_v2 = vld [vmem:[%s6983_s1 + $0x290] sm:$0xf0]  ;;  %v3190_v7 = vor.u32 %v4422_v61, %v3187_v62 }
  0x43   :  { %1531 = vmatpush.bf16.msrb.mxu3 %v2998_v26  ;;  %1490 = vmatmul.bf16.vlgmr.msrb.gmra.mxu0 %v5254_v37  ;;  %v4486_v3 = vld [vmem:[%s6983_s1 + $0x384] sm:$0xf]  ;;  %v3443_v4 = vld [vmem:[%s6983_s1 + $0x390] sm:$0xf0]  ;;  %v3318_v8 = vor.u32 %v4454_v63, %v3315_v2 }
  0x44   :  { %1538 = vmatpush.bf16.msra.mxu0 %v3238_v27  ;;  %1504 = vmatmul.bf16.vlgmr.msrb.gmra.mxu1 %v5267_v42  ;;  %v4518_v5 = vld [vmem:[%s6983_s1 + $0x484] sm:$0xf]  ;;  %v3571_v6 = vld [vmem:[%s6983_s1 + $0x490] sm:$0xf0]  ;;  %v3446_v9 = vor.u32 %v4486_v3, %v3443_v4  ;;  %v3113_v3 = vld [vmem:[%s6983_s1 + $0xe8] sm:$0xf] }
  0x45   :  { %1552 = vmatpush.bf16.msra.mxu1 %v3366_v31  ;;  %1518 = vmatmul.bf16.vlgmr.msrb.gmra.mxu2 %v5265_v41  ;;  %v4418_v10 = vld [vmem:[%s6983_s1 + $0x164] sm:$0xf]  ;;  %v3171_v12 = vld [vmem:[%s6983_s1 + $0x170] sm:$0xf0]  ;;  %v3574_v14 = vor.u32 %v4518_v5, %v3571_v6  ;;  %v4405_v4 = vld [vmem:[%s6983_s1 + $0xf4] sm:$0xf0] }
  0x46   :  { %1566 = vmatpush.bf16.msra.mxu2 %v3494_v32  ;;  %1532 = vmatmul.bf16.vlgmr.msrb.gmra.mxu3 %v5035_v57  ;;  %v4450_v13 = vld [vmem:[%s6983_s1 + $0x264] sm:$0xf]  ;;  %v3299_v15 = vld [vmem:[%s6983_s1 + $0x270] sm:$0xf0]  ;;  %v3174_v20 = vor.u32 %v4418_v10, %v3171_v12 }
  0x47   :  { %1580 = vmatpush.bf16.msra.mxu3 %v3622_v36  ;;  %v4482_v16 = vld [vmem:[%s6983_s1 + $0x364] sm:$0xf]  ;;  %v3427_v17 = vld [vmem:[%s6983_s1 + $0x370] sm:$0xf0]  ;;  %v3302_v21 = vor.u32 %v4450_v13, %v3299_v15  ;;  %v3114_v13 = vor.u32 %v4405_v4, %v3113_v3 }
  0x48   :  { %1539 = vmatpush.bf16.msra.mxu0 %v3222_v45  ;;  %v4514_v18 = vld [vmem:[%s6983_s1 + $0x464] sm:$0xf]  ;;  %v3555_v19 = vld [vmem:[%s6983_s1 + $0x470] sm:$0xf0]  ;;  %v3430_v22 = vor.u32 %v4482_v16, %v3427_v17 }
  0x49   :  { %1553 = vmatpush.bf16.msra.mxu1 %v3350_v46  ;;  %v4414_v24 = vld [vmem:[%s6983_s1 + $0x144] sm:$0xf]  ;;  %v3155_v25 = vld [vmem:[%s6983_s1 + $0x150] sm:$0xf0]  ;;  %v3558_v27 = vor.u32 %v4514_v18, %v3555_v19  ;;  %v3097_v19 = vld [vmem:[%s6983_s1 + $0xc8] sm:$0xf] }
  0x4a   :  { %1567 = vmatpush.bf16.msra.mxu2 %v3478_v47  ;;  %v4446_v26 = vld [vmem:[%s6983_s1 + $0x244] sm:$0xf]  ;;  %v3283_v28 = vld [vmem:[%s6983_s1 + $0x250] sm:$0xf0]  ;;  %v3158_v33 = vor.u32 %v4414_v24, %v3155_v25 }
  0x4b   :  { %1581 = vmatpush.bf16.msra.mxu3 %v3606_v51  ;;  %v4478_v29 = vld [vmem:[%s6983_s1 + $0x344] sm:$0xf]  ;;  %v3411_v30 = vld [vmem:[%s6983_s1 + $0x350] sm:$0xf0]  ;;  %v3286_v34 = vor.u32 %v4446_v26, %v3283_v28 }
  0x4c   :  { %1540 = vmatpush.bf16.msra.mxu0 %v3206_v58  ;;  %v4510_v31 = vld [vmem:[%s6983_s1 + $0x444] sm:$0xf]  ;;  %v3539_v32 = vld [vmem:[%s6983_s1 + $0x450] sm:$0xf0]  ;;  %v3414_v35 = vor.u32 %v4478_v29, %v3411_v30 }
  0x4d   :  { %1554 = vmatpush.bf16.msra.mxu1 %v3334_v59  ;;  %v4410_v36 = vld [vmem:[%s6983_s1 + $0x124] sm:$0xf]  ;;  %v3139_v38 = vld [vmem:[%s6983_s1 + $0x130] sm:$0xf0]  ;;  %v3542_v40 = vor.u32 %v4510_v31, %v3539_v32  ;;  %v3081_v32 = vld [vmem:[%s6983_s1 + $0xa8] sm:$0xf] }
  0x4e   :  { %1568 = vmatpush.bf16.msra.mxu2 %v3462_v60  ;;  %v4442_v39 = vld [vmem:[%s6983_s1 + $0x224] sm:$0xf]  ;;  %v3267_v43 = vld [vmem:[%s6983_s1 + $0x230] sm:$0xf0]  ;;  %v3142_v48 = vor.u32 %v4410_v36, %v3139_v38 }
  0x4f   :  { %1582 = vmatpush.bf16.msra.mxu3 %v3590_v1  ;;  %v4474_v44 = vld [vmem:[%s6983_s1 + $0x324] sm:$0xf]  ;;  %v3395_v45 = vld [vmem:[%s6983_s1 + $0x330] sm:$0xf0]  ;;  %v3270_v51 = vor.u32 %v4442_v39, %v3267_v43 }
  0x50   :  { %1541 = vmatpush.bf16.msra.mxu0 %v3190_v7  ;;  %v4506_v46 = vld [vmem:[%s6983_s1 + $0x424] sm:$0xf]  ;;  %v3523_v47 = vld [vmem:[%s6983_s1 + $0x430] sm:$0xf0]  ;;  %v3398_v52 = vor.u32 %v4474_v44, %v3395_v45  ;;  %v3241_v7 = vld [vmem:[%s6983_s1 + $0x1e8] sm:$0xf] }
  0x51   :  { %1555 = vmatpush.bf16.msra.mxu1 %v3318_v8  ;;  %v4406_v49 = vld [vmem:[%s6983_s1 + $0x104] sm:$0xf]  ;;  %v3123_v50 = vld [vmem:[%s6983_s1 + $0x110] sm:$0xf0]  ;;  %v3526_v56 = vor.u32 %v4506_v46, %v3523_v47  ;;  %v4437_v8 = vld [vmem:[%s6983_s1 + $0x1f4] sm:$0xf0] }
  0x52   :  { %1569 = vmatpush.bf16.msra.mxu2 %v3446_v9  ;;  %v4438_v53 = vld [vmem:[%s6983_s1 + $0x204] sm:$0xf]  ;;  %v3251_v54 = vld [vmem:[%s6983_s1 + $0x210] sm:$0xf0]  ;;  %v3126_v1 = vor.u32 %v4406_v49, %v3123_v50  ;;  %v3242_v17 = vor.u32 %v4437_v8, %v3241_v7  ;;  %v3065_v47 = vld [vmem:[%s6983_s1 + $0x88] sm:$0xf] }
  0x53   :  { %1583 = vmatpush.bf16.msra.mxu3 %v3574_v14  ;;  %v4470_v55 = vld [vmem:[%s6983_s1 + $0x304] sm:$0xf]  ;;  %v3379_v58 = vld [vmem:[%s6983_s1 + $0x310] sm:$0xf0]  ;;  %v3254_v5 = vor.u32 %v4438_v53, %v3251_v54  ;;  %v3193_v49 = vld [vmem:[%s6983_s1 + $0x188] sm:$0xf] }
  0x54   :  { %1542 = vmatpush.bf16.msra.mxu0 %v3174_v20  ;;  %v4502_v59 = vld [vmem:[%s6983_s1 + $0x404] sm:$0xf]  ;;  %v3507_v60 = vld [vmem:[%s6983_s1 + $0x410] sm:$0xf0]  ;;  %v3382_v6 = vor.u32 %v4470_v55, %v3379_v58  ;;  %v4401_v20 = vld [vmem:[%s6983_s1 + $0xd4] sm:$0xf0] }
  0x55   :  { %1556 = vmatpush.bf16.msra.mxu1 %v3302_v21  ;;  %v4562_v61 = vld [vmem:[%s6983_s1 + $0x5e4] sm:$0xf]  ;;  %v3747_v62 = vld [vmem:[%s6983_s1 + $0x5f0] sm:$0xf0]  ;;  %v3510_v9 = vor.u32 %v4502_v59, %v3507_v60  ;;  %v3225_v21 = vld [vmem:[%s6983_s1 + $0x1c8] sm:$0xf]  ;;  %v3098_v26 = vor.u32 %v4401_v20, %v3097_v19 }
  0x56   :  { %1570 = vmatpush.bf16.msra.mxu2 %v3430_v22  ;;  %v4594_v63 = vld [vmem:[%s6983_s1 + $0x6e4] sm:$0xf]  ;;  %v3875_v2 = vld [vmem:[%s6983_s1 + $0x6f0] sm:$0xf0]  ;;  %v3750_v10 = vor.u32 %v4562_v61, %v3747_v62  ;;  %v4433_v22 = vld [vmem:[%s6983_s1 + $0x1d4] sm:$0xf0] }
  0x57   :  { %1584 = vmatpush.bf16.msra.mxu3 %v3558_v27  ;;  %v3878_v12 = vor.u32 %v4594_v63, %v3875_v2  ;;  %v4558_v14 = vld [vmem:[%s6983_s1 + $0x5c4] sm:$0xf]  ;;  %v3731_v15 = vld [vmem:[%s6983_s1 + $0x5d0] sm:$0xf0]  ;;  %v3226_v30 = vor.u32 %v4433_v22, %v3225_v21  ;;  %v4425_v50 = vld [vmem:[%s6983_s1 + $0x194] sm:$0xf0] }
  0x58   :  { %1543 = vmatpush.bf16.msra.mxu0 %v3158_v33  ;;  %v4590_v16 = vld [vmem:[%s6983_s1 + $0x6c4] sm:$0xf]  ;;  %v3859_v18 = vld [vmem:[%s6983_s1 + $0x6d0] sm:$0xf0]  ;;  %v3734_v24 = vor.u32 %v4558_v14, %v3731_v15  ;;  %v4397_v33 = vld [vmem:[%s6983_s1 + $0xb4] sm:$0xf0]  ;;  %v3194_v58 = vor.u32 %v4425_v50, %v3193_v49 }
  0x59   :  { %1557 = vmatpush.bf16.msra.mxu1 %v3286_v34  ;;  %v3862_v25 = vor.u32 %v4590_v16, %v3859_v18  ;;  %v4554_v27 = vld [vmem:[%s6983_s1 + $0x5a4] sm:$0xf]  ;;  %v3715_v28 = vld [vmem:[%s6983_s1 + $0x5b0] sm:$0xf0]  ;;  %v3209_v34 = vld [vmem:[%s6983_s1 + $0x1a8] sm:$0xf]  ;;  %v3082_v39 = vor.u32 %v4397_v33, %v3081_v32 }
  0x5a   :  { %1571 = vmatpush.bf16.msra.mxu2 %v3414_v35  ;;  %v4586_v29 = vld [vmem:[%s6983_s1 + $0x6a4] sm:$0xf]  ;;  %v3843_v31 = vld [vmem:[%s6983_s1 + $0x6b0] sm:$0xf0]  ;;  %v4429_v35 = vld [vmem:[%s6983_s1 + $0x1b4] sm:$0xf0]  ;;  %v3718_v36 = vor.u32 %v4554_v27, %v3715_v28 }
  0x5b   :  { %1585 = vmatpush.bf16.msra.mxu3 %v3542_v40  ;;  %v3846_v38 = vor.u32 %v4586_v29, %v3843_v31  ;;  %v4550_v40 = vld [vmem:[%s6983_s1 + $0x584] sm:$0xf]  ;;  %v3699_v43 = vld [vmem:[%s6983_s1 + $0x590] sm:$0xf0]  ;;  %v3210_v45 = vor.u32 %v4429_v35, %v3209_v34  ;;  %v3049_v60 = vld [vmem:[%s6983_s1 + $0x68] sm:$0xf] }
  0x5c   :  { %1544 = vmatpush.bf16.msra.mxu0 %v3142_v48  ;;  %v4582_v44 = vld [vmem:[%s6983_s1 + $0x684] sm:$0xf]  ;;  %v3827_v46 = vld [vmem:[%s6983_s1 + $0x690] sm:$0xf0]  ;;  %v4393_v48 = vld [vmem:[%s6983_s1 + $0x94] sm:$0xf0] }
  0x5d   :  { %1558 = vmatpush.bf16.msra.mxu1 %v3270_v51  ;;  %v3702_v51 = vor.u32 %v4550_v40, %v3699_v43  ;;  %v3066_v53 = vor.u32 %v4393_v48, %v3065_v47  ;;  %v4546_v54 = vld [vmem:[%s6983_s1 + $0x564] sm:$0xf]  ;;  %v3683_v55 = vld [vmem:[%s6983_s1 + $0x570] sm:$0xf0]  ;;  %v4389_v61 = vld [vmem:[%s6983_s1 + $0x74] sm:$0xf0] }
  0x5e   :  { %1572 = vmatpush.bf16.msra.mxu2 %v3398_v52  ;;  %v3830_v52 = vor.u32 %v4582_v44, %v3827_v46  ;;  %v3811_v59 = vld [vmem:[%s6983_s1 + $0x670] sm:$0xf0]  ;;  %v3177_v62 = vld [vmem:[%s6983_s1 + $0x168] sm:$0xf]  ;;  %v4421_v63 = vld [vmem:[%s6983_s1 + $0x174] sm:$0xf0]  ;;  %v3050_v3 = vor.u32 %v4389_v61, %v3049_v60 }
  0x5f   :  { %1586 = vmatpush.bf16.msra.mxu3 %v3526_v56  ;;  %v4578_v56 = vld [vmem:[%s6983_s1 + $0x664] sm:$0xf]  ;;  %v3178_v7 = vor.u32 %v4421_v63, %v3177_v62  ;;  %v3795_v8 = vld [vmem:[%s6983_s1 + $0x650] sm:$0xf0]  ;;  %v3017_v22 = vld [vmem:[%s6983_s1 + $0x28] sm:$0xf] }
  0x60   :  { %1545 = vmatpush.bf16.msra.mxu0 %v3126_v1  ;;  %v3686_v1 = vor.u32 %v4546_v54, %v3683_v55  ;;  %v3814_v2 = vor.u32 %v4578_v56, %v3811_v59  ;;  %v4542_v4 = vld [vmem:[%s6983_s1 + $0x544] sm:$0xf]  ;;  %v3651_v18 = vld [vmem:[%s6983_s1 + $0x530] sm:$0xf0]  ;;  %v3001_v34 = vld [vmem:[%s6983_s1 + $0x8] sm:$0xf] }
  0x61   :  { %1559 = vmatpush.bf16.msra.mxu1 %v3254_v5  ;;  %v3667_v5 = vld [vmem:[%s6983_s1 + $0x550] sm:$0xf0]  ;;  %v4570_v19 = vld [vmem:[%s6983_s1 + $0x624] sm:$0xf]  ;;  %v3369_v40 = vld [vmem:[%s6983_s1 + $0x2e8] sm:$0xf] }
  0x62   :  { %1573 = vmatpush.bf16.msra.mxu2 %v3382_v6  ;;  %v4574_v6 = vld [vmem:[%s6983_s1 + $0x644] sm:$0xf]  ;;  %v3670_v14 = vor.u32 %v4542_v4, %v3667_v5  ;;  %v3779_v21 = vld [vmem:[%s6983_s1 + $0x630] sm:$0xf0]  ;;  %v4469_v43 = vld [vmem:[%s6983_s1 + $0x2f4] sm:$0xf0] }
  0x63   :  { %1587 = vmatpush.bf16.msra.mxu3 %v3510_v9  ;;  %1546 = vmatmul.bf16.vlgmr.msra.gmra.mxu0 %v5077_v11  ;;  %v3033_v9 = vld [vmem:[%s6983_s1 + $0x48] sm:$0xf]  ;;  %v3798_v15 = vor.u32 %v4574_v6, %v3795_v8  ;;  %v4534_v28 = vld [vmem:[%s6983_s1 + $0x504] sm:$0xf]  ;;  %v3635_v29 = vld [vmem:[%s6983_s1 + $0x510] sm:$0xf0]  ;;  %v3370_v54 = vor.u32 %v4469_v43, %v3369_v40 }
  0x64   :  { %1594 = vmatpush.bf16.msrb.mxu0 %v3750_v10  ;;  %1560 = vmatmul.bf16.vlgmr.msra.gmra.mxu1 %v5049_v0  ;;  %v4385_v10 = vld [vmem:[%s6983_s1 + $0x54] sm:$0xf0]  ;;  %v4566_v32 = vld [vmem:[%s6983_s1 + $0x604] sm:$0xf]  ;;  %v3763_v33 = vld [vmem:[%s6983_s1 + $0x610] sm:$0xf0] }
  0x65   :  { %1608 = vmatpush.bf16.msrb.mxu1 %v3878_v12  ;;  %1574 = vmatmul.bf16.vlgmr.msra.gmra.mxu2 %v5104_v23  ;;  %v3161_v12 = vld [vmem:[%s6983_s1 + $0x148] sm:$0xf]  ;;  %v3034_v16 = vor.u32 %v4385_v10, %v3033_v9  ;;  %v4501_v46 = vld [vmem:[%s6983_s1 + $0x3f4] sm:$0xf0]  ;;  %v3766_v49 = vor.u32 %v4566_v32, %v3763_v33 }
  0x66   :  { %1622 = vmatpush.bf16.msrb.mxu2 %v3114_v13  ;;  %1588 = vmatmul.bf16.vlgmr.msra.gmra.mxu3 %v5254_v37  ;;  %v4417_v13 = vld [vmem:[%s6983_s1 + $0x154] sm:$0xf0]  ;;  %v3497_v44 = vld [vmem:[%s6983_s1 + $0x3e8] sm:$0xf] }
  0x67   :  { %1636 = vmatpush.bf16.msrb.mxu3 %v3242_v17  ;;  %v4538_v17 = vld [vmem:[%s6983_s1 + $0x524] sm:$0xf]  ;;  %v3162_v20 = vor.u32 %v4417_v13, %v3161_v12  ;;  %v3625_v47 = vld [vmem:[%s6983_s1 + $0x4e8] sm:$0xf]  ;;  %v4533_v48 = vld [vmem:[%s6983_s1 + $0x4f4] sm:$0xf0]  ;;  %v3498_v55 = vor.u32 %v4501_v46, %v3497_v44 }
  0x68   :  { %1595 = vmatpush.bf16.msrb.mxu0 %v3734_v24  ;;  %v4381_v24 = vld [vmem:[%s6983_s1 + $0x34] sm:$0xf0]  ;;  %v3654_v27 = vor.u32 %v4538_v17, %v3651_v18  ;;  %v3626_v56 = vor.u32 %v4533_v48, %v3625_v47  ;;  %v3481_v60 = vld [vmem:[%s6983_s1 + $0x3c8] sm:$0xf] }
  0x69   :  { %1609 = vmatpush.bf16.msrb.mxu1 %v3862_v25  ;;  %v3145_v25 = vld [vmem:[%s6983_s1 + $0x128] sm:$0xf]  ;;  %v3018_v31 = vor.u32 %v4381_v24, %v3017_v22  ;;  %v4465_v59 = vld [vmem:[%s6983_s1 + $0x2d4] sm:$0xf0] }
  0x6a   :  { %1623 = vmatpush.bf16.msrb.mxu2 %v3098_v26  ;;  %v4413_v26 = vld [vmem:[%s6983_s1 + $0x134] sm:$0xf0]  ;;  %v3609_v63 = vld [vmem:[%s6983_s1 + $0x4c8] sm:$0xf] }
  0x6b   :  { %1637 = vmatpush.bf16.msrb.mxu3 %v3226_v30  ;;  %v3782_v30 = vor.u32 %v4570_v19, %v3779_v21  ;;  %v3146_v35 = vor.u32 %v4413_v26, %v3145_v25  ;;  %v4497_v62 = vld [vmem:[%s6983_s1 + $0x3d4] sm:$0xf0]  ;;  %v3465_v9 = vld [vmem:[%s6983_s1 + $0x3a8] sm:$0xf] }
  0x6c   :  { %1596 = vmatpush.bf16.msrb.mxu0 %v3718_v36  ;;  %v4377_v36 = vld [vmem:[%s6983_s1 + $0x14] sm:$0xf0]  ;;  %v3482_v5 = vor.u32 %v4497_v62, %v3481_v60  ;;  %v3593_v13 = vld [vmem:[%s6983_s1 + $0x4a8] sm:$0xf] }
  0x6d   :  { %1610 = vmatpush.bf16.msrb.mxu1 %v3846_v38  ;;  %v3129_v38 = vld [vmem:[%s6983_s1 + $0x108] sm:$0xf]  ;;  %v3002_v50 = vor.u32 %v4377_v36, %v3001_v34  ;;  %v4461_v8 = vld [vmem:[%s6983_s1 + $0x2b4] sm:$0xf0] }
  0x6e   :  { %1624 = vmatpush.bf16.msrb.mxu2 %v3082_v39  ;;  %v4409_v39 = vld [vmem:[%s6983_s1 + $0x114] sm:$0xf0]  ;;  %v3449_v22 = vld [vmem:[%s6983_s1 + $0x388] sm:$0xf] }
  0x6f   :  { %1638 = vmatpush.bf16.msrb.mxu3 %v3210_v45  ;;  %v3638_v45 = vor.u32 %v4534_v28, %v3635_v29  ;;  %v4493_v12 = vld [vmem:[%s6983_s1 + $0x3b4] sm:$0xf0]  ;;  %v3577_v26 = vld [vmem:[%s6983_s1 + $0x488] sm:$0xf] }
  0x70   :  { %1597 = vmatpush.bf16.msrb.mxu0 %v3702_v51  ;;  %v3753_v51 = vld [vmem:[%s6983_s1 + $0x5e8] sm:$0xf]  ;;  %v3466_v18 = vor.u32 %v4493_v12, %v3465_v9  ;;  %v4457_v21 = vld [vmem:[%s6983_s1 + $0x294] sm:$0xf0] }
  0x71   :  { %1611 = vmatpush.bf16.msrb.mxu1 %v3830_v52  ;;  %v4565_v52 = vld [vmem:[%s6983_s1 + $0x5f4] sm:$0xf0]  ;;  %v3705_v28 = vld [vmem:[%s6983_s1 + $0x588] sm:$0xf] }
  0x72   :  { %1625 = vmatpush.bf16.msrb.mxu2 %v3066_v53  ;;  %v3130_v53 = vor.u32 %v4409_v39, %v3129_v38  ;;  %v3754_v61 = vor.u32 %v4565_v52, %v3753_v51  ;;  %v4489_v25 = vld [vmem:[%s6983_s1 + $0x394] sm:$0xf0]  ;;  %v3305_v33 = vld [vmem:[%s6983_s1 + $0x268] sm:$0xf] }
  0x73   :  { %1639 = vmatpush.bf16.msrb.mxu3 %v3194_v58  ;;  %v3353_v58 = vld [vmem:[%s6983_s1 + $0x2c8] sm:$0xf]  ;;  %v4553_v29 = vld [vmem:[%s6983_s1 + $0x594] sm:$0xf0] }
  0x74   :  { %1598 = vmatpush.bf16.msrb.mxu0 %v3686_v1  ;;  %v4529_v1 = vld [vmem:[%s6983_s1 + $0x4d4] sm:$0xf0]  ;;  %v3354_v4 = vor.u32 %v4465_v59, %v3353_v58  ;;  %v3706_v36 = vor.u32 %v4553_v29, %v3705_v28  ;;  %v3561_v39 = vld [vmem:[%s6983_s1 + $0x468] sm:$0xf] }
  0x75   :  { %1612 = vmatpush.bf16.msrb.mxu1 %v3814_v2  ;;  %v3737_v2 = vld [vmem:[%s6983_s1 + $0x5c8] sm:$0xf]  ;;  %v3610_v6 = vor.u32 %v4529_v1, %v3609_v63  ;;  %v4453_v34 = vld [vmem:[%s6983_s1 + $0x274] sm:$0xf0] }
  0x76   :  { %1626 = vmatpush.bf16.msrb.mxu2 %v3050_v3  ;;  %v4561_v3 = vld [vmem:[%s6983_s1 + $0x5d4] sm:$0xf0]  ;;  %v3689_v43 = vld [vmem:[%s6983_s1 + $0x568] sm:$0xf] }
  0x77   :  { %1640 = vmatpush.bf16.msrb.mxu3 %v3178_v7  ;;  %v3337_v7 = vld [vmem:[%s6983_s1 + $0x2a8] sm:$0xf]  ;;  %v3738_v10 = vor.u32 %v4561_v3, %v3737_v2  ;;  %v4485_v38 = vld [vmem:[%s6983_s1 + $0x374] sm:$0xf0] }
  0x78   :  { %1599 = vmatpush.bf16.msrb.mxu0 %v3670_v14  ;;  %v4525_v14 = vld [vmem:[%s6983_s1 + $0x4b4] sm:$0xf0]  ;;  %v3338_v17 = vor.u32 %v4461_v8, %v3337_v7  ;;  %v3289_v48 = vld [vmem:[%s6983_s1 + $0x248] sm:$0xf] }
  0x79   :  { %1613 = vmatpush.bf16.msrb.mxu1 %v3798_v15  ;;  %v3721_v15 = vld [vmem:[%s6983_s1 + $0x5a8] sm:$0xf]  ;;  %v3594_v19 = vor.u32 %v4525_v14, %v3593_v13  ;;  %v4517_v40 = vld [vmem:[%s6983_s1 + $0x474] sm:$0xf0] }
  0x7a   :  { %1627 = vmatpush.bf16.msrb.mxu2 %v3034_v16  ;;  %v4557_v16 = vld [vmem:[%s6983_s1 + $0x5b4] sm:$0xf0]  ;;  %v3562_v47 = vor.u32 %v4517_v40, %v3561_v39  ;;  %v3401_v63 = vld [vmem:[%s6983_s1 + $0x328] sm:$0xf]  ;;  %v4399_v39 = vld [vmem:[%s6983_s1 + $0xcc] sm:$0xf] }
  0x7b   :  { %1641 = vmatpush.bf16.msrb.mxu3 %v3162_v20  ;;  %v3321_v20 = vld [vmem:[%s6983_s1 + $0x288] sm:$0xf]  ;;  %v3722_v24 = vor.u32 %v4557_v16, %v3721_v15  ;;  %v4549_v44 = vld [vmem:[%s6983_s1 + $0x574] sm:$0xf0] }
  0x7c   :  { %1600 = vmatpush.bf16.msrb.mxu0 %v3654_v27  ;;  %v4521_v27 = vld [vmem:[%s6983_s1 + $0x494] sm:$0xf0]  ;;  %v3690_v51 = vor.u32 %v4549_v44, %v3689_v43  ;;  %v3529_v3 = vld [vmem:[%s6983_s1 + $0x428] sm:$0xf]  ;;  %v3099_v43 = vld [vmem:[%s6983_s1 + $0xd8] sm:$0xf0] }
  0x7d   :  { %1614 = vmatpush.bf16.msrb.mxu1 %v3782_v30  ;;  %v3322_v30 = vor.u32 %v4457_v21, %v3321_v20  ;;  %v3578_v32 = vor.u32 %v4521_v27, %v3577_v26  ;;  %v4481_v52 = vld [vmem:[%s6983_s1 + $0x354] sm:$0xf0]  ;;  %v3257_v8 = vld [vmem:[%s6983_s1 + $0x208] sm:$0xf]  ;;  %v4435_v26 = vld [vmem:[%s6983_s1 + $0x1ec] sm:$0xf] }
  0x7e   :  { %1628 = vmatpush.bf16.msrb.mxu2 %v3018_v31  ;;  %v3450_v31 = vor.u32 %v4489_v25, %v3449_v22  ;;  %v4445_v62 = vld [vmem:[%s6983_s1 + $0x234] sm:$0xf0]  ;;  %v3385_v13 = vld [vmem:[%s6983_s1 + $0x308] sm:$0xf]  ;;  %v4403_v22 = vld [vmem:[%s6983_s1 + $0xec] sm:$0xf] }
  0x7f   :  { %1642 = vmatpush.bf16.msrb.mxu3 %v3146_v35  ;;  %v3433_v35 = vld [vmem:[%s6983_s1 + $0x368] sm:$0xf]  ;;  %v4477_v2 = vld [vmem:[%s6983_s1 + $0x334] sm:$0xf0]  ;;  %v3115_v25 = vld [vmem:[%s6983_s1 + $0xf8] sm:$0xf0] }
  0x80   :  { %1601 = vmatpush.bf16.msrb.mxu0 %v3638_v45  ;;  %v3306_v45 = vor.u32 %v4453_v34, %v3305_v33  ;;  %v3434_v46 = vor.u32 %v4485_v38, %v3433_v35  ;;  %v4441_v9 = vld [vmem:[%s6983_s1 + $0x214] sm:$0xf0]  ;;  %v3513_v15 = vld [vmem:[%s6983_s1 + $0x408] sm:$0xf]  ;;  %v3243_v27 = vld [vmem:[%s6983_s1 + $0x1f8] sm:$0xf0]  ;;  %v3118_v34 = vor.u32 %v4403_v22, %v3115_v25 }
  0x81   :  { %1615 = vmatpush.bf16.msrb.mxu1 %v3766_v49  ;;  %v4449_v49 = vld [vmem:[%s6983_s1 + $0x254] sm:$0xf0]  ;;  %v3881_v20 = vld [vmem:[%s6983_s1 + $0x6e8] sm:$0xf]  ;;  %v3246_v35 = vor.u32 %v4435_v26, %v3243_v27  ;;  %v4431_v44 = vld [vmem:[%s6983_s1 + $0x1cc] sm:$0xf] }
  0x82   :  { %1629 = vmatpush.bf16.msrb.mxu2 %v3002_v50  ;;  %v3417_v50 = vld [vmem:[%s6983_s1 + $0x348] sm:$0xf]  ;;  %v3290_v58 = vor.u32 %v4449_v49, %v3289_v48  ;;  %v4473_v14 = vld [vmem:[%s6983_s1 + $0x314] sm:$0xf0]  ;;  %v3102_v49 = vor.u32 %v4399_v39, %v3099_v43  ;;  %v3307_v22 = vld [vmem:[%s6983_s1 + $0x278] sm:$0xf0] }
  0x83   :  { %1643 = vmatpush.bf16.msrb.mxu3 %v3130_v53  ;;  %1602 = vmatmul.bf16.vlgmr.msrb.gmra.mxu0 %v5267_v42  ;;  %v3545_v53 = vld [vmem:[%s6983_s1 + $0x448] sm:$0xf]  ;;  %v3418_v59 = vor.u32 %v4481_v52, %v3417_v50  ;;  %v4597_v21 = vld [vmem:[%s6983_s1 + $0x6f4] sm:$0xf0]  ;;  %v3386_v28 = vor.u32 %v4473_v14, %v3385_v13 }
  0x84   :  { %1650 = vmatpush.bf16.msra.mxu0 %v3370_v54  ;;  %1616 = vmatmul.bf16.vlgmr.msrb.gmra.mxu1 %v5265_v41  ;;  %v4513_v54 = vld [vmem:[%s6983_s1 + $0x454] sm:$0xf0]  ;;  %v3882_v33 = vor.u32 %v4597_v21, %v3881_v20  ;;  %v3817_v14 = vld [vmem:[%s6983_s1 + $0x668] sm:$0xf]  ;;  %v3179_v20 = vld [vmem:[%s6983_s1 + $0x178] sm:$0xf0] }
  0x85   :  { %1664 = vmatpush.bf16.msra.mxu1 %v3498_v55  ;;  %1630 = vmatmul.bf16.vlgmr.msrb.gmra.mxu2 %v5035_v57  ;;  %v3673_v55 = vld [vmem:[%s6983_s1 + $0x548] sm:$0xf]  ;;  %v3546_v60 = vor.u32 %v4513_v54, %v3545_v53  ;;  %v4593_v38 = vld [vmem:[%s6983_s1 + $0x6d4] sm:$0xf0]  ;;  %v4395_v53 = vld [vmem:[%s6983_s1 + $0xac] sm:$0xf] }
  0x86   :  { %1678 = vmatpush.bf16.msra.mxu2 %v3626_v56  ;;  %1644 = vmatmul.bf16.vlgmr.msrb.gmra.mxu3 %v5077_v11  ;;  %v4545_v56 = vld [vmem:[%s6983_s1 + $0x554] sm:$0xf0]  ;;  %v4451_v21 = vld [vmem:[%s6983_s1 + $0x26c] sm:$0xf]  ;;  %v3801_v27 = vld [vmem:[%s6983_s1 + $0x648] sm:$0xf] }
  0x87   :  { %1692 = vmatpush.bf16.msra.mxu3 %v3754_v61  ;;  %v3273_v61 = vld [vmem:[%s6983_s1 + $0x228] sm:$0xf]  ;;  %v3674_v1 = vor.u32 %v4545_v56, %v3673_v55  ;;  %v4589_v52 = vld [vmem:[%s6983_s1 + $0x6b4] sm:$0xf0]  ;;  %v3083_v55 = vld [vmem:[%s6983_s1 + $0xb8] sm:$0xf0] }
  0x88   :  { %1651 = vmatpush.bf16.msra.mxu0 %v3354_v4  ;;  %v4509_v4 = vld [vmem:[%s6983_s1 + $0x434] sm:$0xf0]  ;;  %v3274_v7 = vor.u32 %v4445_v62, %v3273_v61  ;;  %v4427_v56 = vld [vmem:[%s6983_s1 + $0x1ac] sm:$0xf]  ;;  %v3086_v62 = vor.u32 %v4395_v53, %v3083_v55 }
  0x89   :  { %1665 = vmatpush.bf16.msra.mxu1 %v3482_v5  ;;  %v3657_v5 = vld [vmem:[%s6983_s1 + $0x528] sm:$0xf]  ;;  %v3530_v12 = vor.u32 %v4509_v4, %v3529_v3  ;;  %v4391_v3 = vld [vmem:[%s6983_s1 + $0x8c] sm:$0xf]  ;;  %v4573_v43 = vld [vmem:[%s6983_s1 + $0x634] sm:$0xf0] }
  0x8a   :  { %1679 = vmatpush.bf16.msra.mxu2 %v3610_v6  ;;  %v4541_v6 = vld [vmem:[%s6983_s1 + $0x534] sm:$0xf0] }
  0x8b   :  { %1693 = vmatpush.bf16.msra.mxu3 %v3738_v10  ;;  %v3402_v10 = vor.u32 %v4477_v2, %v3401_v63  ;;  %v3658_v16 = vor.u32 %v4541_v6, %v3657_v5  ;;  %v4585_v2 = vld [vmem:[%s6983_s1 + $0x694] sm:$0xf0]  ;;  %v3067_v5 = vld [vmem:[%s6983_s1 + $0x98] sm:$0xf0]  ;;  %v4423_v6 = vld [vmem:[%s6983_s1 + $0x18c] sm:$0xf] }
  0x8c   :  { %1652 = vmatpush.bf16.msra.mxu0 %v3338_v17  ;;  %v4505_v17 = vld [vmem:[%s6983_s1 + $0x414] sm:$0xf0] }
  0x8d   :  { %1666 = vmatpush.bf16.msra.mxu1 %v3466_v18  ;;  %v3641_v18 = vld [vmem:[%s6983_s1 + $0x508] sm:$0xf]  ;;  %v3514_v29 = vor.u32 %v4505_v17, %v3513_v15  ;;  %v4581_v15 = vld [vmem:[%s6983_s1 + $0x674] sm:$0xf0] }
  0x8e   :  { %1680 = vmatpush.bf16.msra.mxu2 %v3594_v19  ;;  %v4537_v19 = vld [vmem:[%s6983_s1 + $0x514] sm:$0xf0] }
  0x8f   :  { %1694 = vmatpush.bf16.msra.mxu3 %v3722_v24  ;;  %v3258_v24 = vor.u32 %v4441_v9, %v3257_v8  ;;  %v4455_v8 = vld [vmem:[%s6983_s1 + $0x28c] sm:$0xf]  ;;  %v3323_v9 = vld [vmem:[%s6983_s1 + $0x298] sm:$0xf0]  ;;  %v4569_v53 = vld [vmem:[%s6983_s1 + $0x614] sm:$0xf0] }
  0x90   :  { %1653 = vmatpush.bf16.msra.mxu0 %v3322_v30  ;;  %v4467_v30 = vld [vmem:[%s6983_s1 + $0x2ec] sm:$0xf]  ;;  %v3326_v17 = vor.u32 %v4455_v8, %v3323_v9 }
  0x91   :  { %1667 = vmatpush.bf16.msra.mxu1 %v3450_v31  ;;  %v3371_v31 = vld [vmem:[%s6983_s1 + $0x2f8] sm:$0xf0] }
  0x92   :  { %1681 = vmatpush.bf16.msra.mxu2 %v3578_v32  ;;  %v3642_v32 = vor.u32 %v4537_v19, %v3641_v18  ;;  %v3374_v40 = vor.u32 %v4467_v30, %v3371_v31  ;;  %v3051_v18 = vld [vmem:[%s6983_s1 + $0x78] sm:$0xf0]  ;;  %v4419_v19 = vld [vmem:[%s6983_s1 + $0x16c] sm:$0xf]  ;;  %v3310_v30 = vor.u32 %v4451_v21, %v3307_v22 }
  0x93   :  { %1695 = vmatpush.bf16.msra.mxu3 %v3706_v36  ;;  %v3865_v36 = vld [vmem:[%s6983_s1 + $0x6c8] sm:$0xf]  ;;  %v3182_v26 = vor.u32 %v4419_v19, %v3179_v20  ;;  %v3035_v31 = vld [vmem:[%s6983_s1 + $0x58] sm:$0xf0]  ;;  %v4527_v19 = vld [vmem:[%s6983_s1 + $0x4cc] sm:$0xf] }
  0x94   :  { %1654 = vmatpush.bf16.msra.mxu0 %v3306_v45  ;;  %v3227_v45 = vld [vmem:[%s6983_s1 + $0x1d8] sm:$0xf0]  ;;  %v3866_v48 = vor.u32 %v4593_v38, %v3865_v36  ;;  %v4559_v22 = vld [vmem:[%s6983_s1 + $0x5cc] sm:$0xf] }
  0x95   :  { %1668 = vmatpush.bf16.msra.mxu1 %v3434_v46  ;;  %v4463_v46 = vld [vmem:[%s6983_s1 + $0x2cc] sm:$0xf]  ;;  %v3230_v50 = vor.u32 %v4431_v44, %v3227_v45  ;;  %v3611_v21 = vld [vmem:[%s6983_s1 + $0x4d8] sm:$0xf0] }
  0x96   :  { %1682 = vmatpush.bf16.msra.mxu2 %v3562_v47  ;;  %v3355_v47 = vld [vmem:[%s6983_s1 + $0x2d8] sm:$0xf0]  ;;  %v4379_v44 = vld [vmem:[%s6983_s1 + $0x2c] sm:$0xf] }
  0x97   :  { %1696 = vmatpush.bf16.msra.mxu3 %v3690_v51  ;;  %v3849_v51 = vld [vmem:[%s6983_s1 + $0x6a8] sm:$0xf]  ;;  %v3358_v54 = vor.u32 %v4463_v46, %v3355_v47  ;;  %v3019_v46 = vld [vmem:[%s6983_s1 + $0x38] sm:$0xf0]  ;;  %v4411_v47 = vld [vmem:[%s6983_s1 + $0x12c] sm:$0xf] }
  0x98   :  { %1655 = vmatpush.bf16.msra.mxu0 %v3290_v58  ;;  %v3211_v58 = vld [vmem:[%s6983_s1 + $0x1b8] sm:$0xf0]  ;;  %v3850_v61 = vor.u32 %v4589_v52, %v3849_v51  ;;  %v3769_v52 = vld [vmem:[%s6983_s1 + $0x608] sm:$0xf] }
  0x99   :  { %1669 = vmatpush.bf16.msra.mxu1 %v3418_v59  ;;  %v4459_v59 = vld [vmem:[%s6983_s1 + $0x2ac] sm:$0xf]  ;;  %v3214_v63 = vor.u32 %v4427_v56, %v3211_v58  ;;  %v3003_v58 = vld [vmem:[%s6983_s1 + $0x18] sm:$0xf0] }
  0x9a   :  { %1683 = vmatpush.bf16.msra.mxu2 %v3546_v60  ;;  %v3339_v60 = vld [vmem:[%s6983_s1 + $0x2b8] sm:$0xf0]  ;;  %v4375_v56 = vld [vmem:[%s6983_s1 + $0xc] sm:$0xf] }
  0x9b   :  { %1697 = vmatpush.bf16.msra.mxu3 %v3674_v1  ;;  %v3833_v1 = vld [vmem:[%s6983_s1 + $0x688] sm:$0xf]  ;;  %v3342_v4 = vor.u32 %v4459_v59, %v3339_v60  ;;  %v4407_v59 = vld [vmem:[%s6983_s1 + $0x10c] sm:$0xf]  ;;  %v3006_v8 = vor.u32 %v4375_v56, %v3003_v58 }
  0x9c   :  { %1656 = vmatpush.bf16.msra.mxu0 %v3274_v7  ;;  %v3195_v7 = vld [vmem:[%s6983_s1 + $0x198] sm:$0xf0]  ;;  %v4515_v56 = vld [vmem:[%s6983_s1 + $0x46c] sm:$0xf] }
  0x9d   :  { %1670 = vmatpush.bf16.msra.mxu1 %v3402_v10  ;;  %v3834_v10 = vor.u32 %v4585_v2, %v3833_v1  ;;  %v3198_v13 = vor.u32 %v4423_v6, %v3195_v7  ;;  %v4499_v1 = vld [vmem:[%s6983_s1 + $0x3ec] sm:$0xf]  ;;  %v3499_v2 = vld [vmem:[%s6983_s1 + $0x3f8] sm:$0xf0] }
  0x9e   :  { %1684 = vmatpush.bf16.msra.mxu2 %v3530_v12  ;;  %v3070_v12 = vor.u32 %v4391_v3, %v3067_v5  ;;  %v4531_v3 = vld [vmem:[%s6983_s1 + $0x4ec] sm:$0xf]  ;;  %v3627_v5 = vld [vmem:[%s6983_s1 + $0x4f8] sm:$0xf0] }
  0x9f   :  { %1698 = vmatpush.bf16.msra.mxu3 %v3658_v16  ;;  %v4387_v16 = vld [vmem:[%s6983_s1 + $0x6c] sm:$0xf]  ;;  %v3755_v7 = vld [vmem:[%s6983_s1 + $0x5f8] sm:$0xf0] }
  0xa0   :  { %1657 = vmatpush.bf16.msra.mxu0 %v3258_v24  ;;  %v3818_v24 = vor.u32 %v4581_v15, %v3817_v14  ;;  %v3054_v25 = vor.u32 %v4387_v16, %v3051_v18  ;;  %v4563_v6 = vld [vmem:[%s6983_s1 + $0x5ec] sm:$0xf]  ;;  %v3502_v14 = vor.u32 %v4499_v1, %v3499_v2  ;;  %v3630_v15 = vor.u32 %v4531_v3, %v3627_v5  ;;  %v3483_v18 = vld [vmem:[%s6983_s1 + $0x3d8] sm:$0xf0] }
  0xa1   :  { %1671 = vmatpush.bf16.msra.mxu1 %v3386_v28  ;;  %v4577_v28 = vld [vmem:[%s6983_s1 + $0x654] sm:$0xf0]  ;;  %v3758_v16 = vor.u32 %v4563_v6, %v3755_v7  ;;  %v3819_v1 = vld [vmem:[%s6983_s1 + $0x678] sm:$0xf0]  ;;  %v4479_v6 = vld [vmem:[%s6983_s1 + $0x34c] sm:$0xf] }
  0xa2   :  { %1685 = vmatpush.bf16.msra.mxu2 %v3514_v29  ;;  %v4383_v29 = vld [vmem:[%s6983_s1 + $0x4c] sm:$0xf]  ;;  %v3802_v36 = vor.u32 %v4577_v28, %v3801_v27  ;;  %v3614_v28 = vor.u32 %v4527_v19, %v3611_v21  ;;  %v3419_v7 = vld [vmem:[%s6983_s1 + $0x358] sm:$0xf0] }
  0xa3   :  { %1699 = vmatpush.bf16.msra.mxu3 %v3642_v32  ;;  %1658 = vmatmul.bf16.vlgmr.msra.gmra.mxu0 %v5049_v0  ;;  %v4415_v32 = vld [vmem:[%s6983_s1 + $0x14c] sm:$0xf]  ;;  %v3038_v38 = vor.u32 %v4383_v29, %v3035_v31  ;;  %v3467_v31 = vld [vmem:[%s6983_s1 + $0x3b8] sm:$0xf0] }
  0xa4   :  { %1706 = vmatpush.bf16.msrb.mxu0 %v3882_v33  ;;  %1672 = vmatmul.bf16.vlgmr.msra.gmra.mxu1 %v5104_v23  ;;  %v3163_v33 = vld [vmem:[%s6983_s1 + $0x158] sm:$0xf0]  ;;  %v4475_v19 = vld [vmem:[%s6983_s1 + $0x32c] sm:$0xf] }
  0xa5   :  { %1720 = vmatpush.bf16.msrb.mxu1 %v3118_v34  ;;  %1686 = vmatmul.bf16.vlgmr.msra.gmra.mxu2 %v5254_v37  ;;  %v4447_v34 = vld [vmem:[%s6983_s1 + $0x24c] sm:$0xf]  ;;  %v3166_v39 = vor.u32 %v4415_v32, %v3163_v33 }
  0xa6   :  { %1734 = vmatpush.bf16.msrb.mxu2 %v3246_v35  ;;  %1700 = vmatmul.bf16.vlgmr.msra.gmra.mxu3 %v5267_v42  ;;  %v3291_v35 = vld [vmem:[%s6983_s1 + $0x258] sm:$0xf0]  ;;  %v4523_v32 = vld [vmem:[%s6983_s1 + $0x4ac] sm:$0xf] }
  0xa7   :  { %1748 = vmatpush.bf16.msrb.mxu3 %v3374_v40  ;;  %v3785_v40 = vld [vmem:[%s6983_s1 + $0x628] sm:$0xf]  ;;  %v3294_v45 = vor.u32 %v4447_v34, %v3291_v35  ;;  %v3595_v34 = vld [vmem:[%s6983_s1 + $0x4b8] sm:$0xf0]  ;;  %v4555_v35 = vld [vmem:[%s6983_s1 + $0x5ac] sm:$0xf] }
  0xa8   :  { %1707 = vmatpush.bf16.msrb.mxu0 %v3866_v48  ;;  %v3147_v48 = vld [vmem:[%s6983_s1 + $0x138] sm:$0xf0]  ;;  %v3786_v51 = vor.u32 %v4573_v43, %v3785_v40  ;;  %v3598_v43 = vor.u32 %v4523_v32, %v3595_v34  ;;  %v4507_v21 = vld [vmem:[%s6983_s1 + $0x42c] sm:$0xf] }
  0xa9   :  { %1721 = vmatpush.bf16.msrb.mxu1 %v3102_v49  ;;  %v4443_v49 = vld [vmem:[%s6983_s1 + $0x22c] sm:$0xf]  ;;  %v3150_v55 = vor.u32 %v4411_v47, %v3147_v48  ;;  %v3707_v48 = vld [vmem:[%s6983_s1 + $0x598] sm:$0xf0] }
  0xaa   :  { %1735 = vmatpush.bf16.msrb.mxu2 %v3230_v50  ;;  %v3275_v50 = vld [vmem:[%s6983_s1 + $0x238] sm:$0xf0]  ;;  %v4551_v47 = vld [vmem:[%s6983_s1 + $0x58c] sm:$0xf] }
  0xab   :  { %1749 = vmatpush.bf16.msrb.mxu3 %v3358_v54  ;;  %v3022_v54 = vor.u32 %v4379_v44, %v3019_v46  ;;  %v3278_v60 = vor.u32 %v4443_v49, %v3275_v50  ;;  %v4583_v49 = vld [vmem:[%s6983_s1 + $0x68c] sm:$0xf]  ;;  %v3835_v50 = vld [vmem:[%s6983_s1 + $0x698] sm:$0xf0]  ;;  %v6137_v2 = vpop.f32.mrf.mxu1 }
  0xac   :  { %1708 = vmatpush.bf16.msrb.mxu0 %v3850_v61  ;;  %v3131_v61 = vld [vmem:[%s6983_s1 + $0x118] sm:$0xf0]  ;;  %v3838_v58 = vor.u32 %v4583_v49, %v3835_v50  ;;  %v4629_v49 = vld [vmem:[%s6985_s3 + $0xf4] sm:$0xf0] }
  0xad   :  { %1722 = vmatpush.bf16.msrb.mxu1 %v3086_v62  ;;  %v4439_v62 = vld [vmem:[%s6983_s1 + $0x20c] sm:$0xf]  ;;  %v3134_v9 = vor.u32 %v4407_v59, %v3131_v61  ;;  %v3563_v59 = vld [vmem:[%s6983_s1 + $0x478] sm:$0xf0] }
  0xae   :  { %1736 = vmatpush.bf16.msrb.mxu2 %v3214_v63  ;;  %v3259_v63 = vld [vmem:[%s6983_s1 + $0x218] sm:$0xf0] }
  0xaf   :  { %1750 = vmatpush.bf16.msrb.mxu3 %v3342_v4  ;;  %v3770_v4 = vor.u32 %v4569_v53, %v3769_v52  ;;  %v3710_v53 = vor.u32 %v4551_v47, %v3707_v48  ;;  %v3691_v61 = vld [vmem:[%s6983_s1 + $0x578] sm:$0xf0]  ;;  %v4009_v48 = vld [vmem:[%s6985_s3 + $0xf0] sm:$0xf] }
  0xb0   :  { %1709 = vmatpush.bf16.msrb.mxu0 %v3834_v10  ;;  %v4595_v10 = vld [vmem:[%s6983_s1 + $0x6ec] sm:$0xf] }
  0xb1   :  { %1723 = vmatpush.bf16.msrb.mxu1 %v3070_v12  ;;  %v3883_v12 = vld [vmem:[%s6983_s1 + $0x6f8] sm:$0xf0] }
  0xb2   :  { %1737 = vmatpush.bf16.msrb.mxu2 %v3198_v13  ;;  %v3262_v13 = vor.u32 %v4439_v62, %v3259_v63  ;;  %v3886_v20 = vor.u32 %v4595_v10, %v3883_v12  ;;  %v6129_v62 = vpop.f32.mrf.mxu0  ;;  %v4579_v63 = vld [vmem:[%s6983_s1 + $0x66c] sm:$0xf]  ;;  %v3547_v10 = vld [vmem:[%s6983_s1 + $0x458] sm:$0xf0] }
  0xb3   :  { %1751 = vmatpush.bf16.msrb.mxu3 %v3326_v17  ;;  %v4495_v17 = vld [vmem:[%s6983_s1 + $0x3cc] sm:$0xf] }
  0xb4   :  { %1710 = vmatpush.bf16.msrb.mxu0 %v3818_v24  ;;  %v3739_v24 = vld [vmem:[%s6983_s1 + $0x5d8] sm:$0xf0]  ;;  %v3486_v27 = vor.u32 %v4495_v17, %v3483_v18  ;;  %v4543_v12 = vld [vmem:[%s6983_s1 + $0x54c] sm:$0xf] }
  0xb5   :  { %1724 = vmatpush.bf16.msrb.mxu1 %v3054_v25  ;;  %v4591_v25 = vld [vmem:[%s6983_s1 + $0x6cc] sm:$0xf]  ;;  %v3742_v29 = vor.u32 %v4559_v22, %v3739_v24  ;;  %v3531_v24 = vld [vmem:[%s6983_s1 + $0x438] sm:$0xf0] }
  0xb6   :  { %1738 = vmatpush.bf16.msrb.mxu2 %v3182_v26  ;;  %v3867_v26 = vld [vmem:[%s6983_s1 + $0x6d8] sm:$0xf0] }
  0xb7   :  { %1752 = vmatpush.bf16.msrb.mxu3 %v3310_v30  ;;  %v4491_v30 = vld [vmem:[%s6983_s1 + $0x3ac] sm:$0xf]  ;;  %v3870_v33 = vor.u32 %v4591_v25, %v3867_v26  ;;  %v3659_v26 = vld [vmem:[%s6983_s1 + $0x538] sm:$0xf0] }
  0xb8   :  { %1711 = vmatpush.bf16.msrb.mxu0 %v3802_v36  ;;  %v3723_v36 = vld [vmem:[%s6983_s1 + $0x5b8] sm:$0xf0]  ;;  %v3470_v40 = vor.u32 %v4491_v30, %v3467_v31  ;;  %v4539_v25 = vld [vmem:[%s6983_s1 + $0x52c] sm:$0xf] }
  0xb9   :  { %1725 = vmatpush.bf16.msrb.mxu1 %v3038_v38  ;;  %v4587_v38 = vld [vmem:[%s6983_s1 + $0x6ac] sm:$0xf]  ;;  %v3726_v44 = vor.u32 %v4555_v35, %v3723_v36  ;;  %v3662_v34 = vor.u32 %v4539_v25, %v3659_v26  ;;  %v3387_v35 = vld [vmem:[%s6983_s1 + $0x318] sm:$0xf0]  ;;  %v3905_v26 = vld [vmem:[%s6985_s3 + $0x20] sm:$0xf] }
  0xba   :  { %1739 = vmatpush.bf16.msrb.mxu2 %v3166_v39  ;;  %v3851_v39 = vld [vmem:[%s6983_s1 + $0x6b8] sm:$0xf0]  ;;  %v4471_v31 = vld [vmem:[%s6983_s1 + $0x30c] sm:$0xf]  ;;  %v6192_v32 = vpop.f32.mrf.mxu0 }
  0xbb   :  { %1753 = vmatpush.bf16.msrb.mxu3 %v3294_v45  ;;  %v4519_v45 = vld [vmem:[%s6983_s1 + $0x48c] sm:$0xf]  ;;  %v3854_v46 = vor.u32 %v4587_v38, %v3851_v39  ;;  %v3515_v38 = vld [vmem:[%s6983_s1 + $0x418] sm:$0xf0]  ;;  %v6203_v39 = vpop.f32.mrf.mxu1  ;;  %v3390_v47 = vor.u32 %v4471_v31, %v3387_v35  ;;  %v4601_v35 = vld [vmem:[%s6985_s3 + $0x14] sm:$0xf0] }
  0xbc   :  { %1712 = vmatpush.bf16.msrb.mxu0 %v3786_v51  ;;  %v4503_v36 = vld [vmem:[%s6983_s1 + $0x40c] sm:$0xf] }
  0xbd   :  { %1726 = vmatpush.bf16.msrb.mxu1 %v3022_v54  ;;  %v4483_v54 = vld [vmem:[%s6983_s1 + $0x36c] sm:$0xf]  ;;  %v3518_v50 = vor.u32 %v4503_v36, %v3515_v38  ;;  %v3961_v36 = vld [vmem:[%s6985_s3 + $0x90] sm:$0xf]  ;;  %v4617_v38 = vld [vmem:[%s6985_s3 + $0x94] sm:$0xf0] }
  0xbe   :  { %1740 = vmatpush.bf16.msrb.mxu2 %v3150_v55  ;;  %v3435_v55 = vld [vmem:[%s6983_s1 + $0x378] sm:$0xf0] }
  0xbf   :  { %1754 = vmatpush.bf16.msrb.mxu3 %v3278_v60  ;;  %v4547_v60 = vld [vmem:[%s6983_s1 + $0x56c] sm:$0xf]  ;;  %v3438_v3 = vor.u32 %v4483_v54, %v3435_v55  ;;  %v4010_v54 = vor.u32 %v4629_v49, %v4009_v48  ;;  %v3937_v55 = vld [vmem:[%s6985_s3 + $0x60] sm:$0xf]  ;;  %v1450_v49 = vadd.f32 %v6137_v2, %v6129_v62  ;;  %v4011_v62 = vld [vmem:[%s6985_s3 + $0xf8] sm:$0xf0] }
  0xc0   :  { %1713 = vmatpush.bf16.msrb.mxu0 %v3770_v4  ;;  %v3566_v4 = vor.u32 %v4515_v56, %v3563_v59  ;;  %v3694_v5 = vor.u32 %v4547_v60, %v3691_v61  ;;  %v4611_v56 = vld [vmem:[%s6985_s3 + $0x64] sm:$0xf0]  ;;  %v3953_v48 = vld [vmem:[%s6985_s3 + $0x80] sm:$0xf] }
  0xc1   :  { %1727 = vmatpush.bf16.msrb.mxu1 %v3006_v8  ;;  %v4511_v8 = vld [vmem:[%s6983_s1 + $0x44c] sm:$0xf]  ;;  %v4627_v59 = vld [vmem:[%s6985_s3 + $0xe4] sm:$0xf0]  ;;  %v3938_v61 = vor.u32 %v4611_v56, %v3937_v55 }
  0xc2   :  { %1741 = vmatpush.bf16.msrb.mxu2 %v3134_v9  ;;  %v3822_v9 = vor.u32 %v4579_v63, %v3819_v1  ;;  %v3550_v17 = vor.u32 %v4511_v8, %v3547_v10  ;;  %v6245_v63 = vpop.f32.mrf.mxu0  ;;  %v1822_v8 = vld [vmem:[%s6986_s2] sm:$0xf]  ;;  %v4607_v10 = vld [vmem:[%s6985_s3 + $0x44] sm:$0xf0] }
  0xc3   :  { %1755 = vmatpush.bf16.msrb.mxu3 %v3262_v13  ;;  %1714 = vmatmul.bf16.vlgmr.msrb.gmra.mxu0 %v5265_v41  ;;  %v3675_v13 = vld [vmem:[%s6983_s1 + $0x558] sm:$0xf0]  ;;  %1824 = vst [vmem:[#allocation1] ss:$9 sm:$0xff] %v1822_v8 }
  0xc4   :  { %1762 = vmatpush.bf16.msra.mxu0 %v3502_v14  ;;  %1728 = vmatmul.bf16.vlgmr.msrb.gmra.mxu1 %v5035_v57  ;;  %v3579_v57 = vld [vmem:[%s6983_s1 + $0x498] sm:$0xf0]  ;;  %v4575_v14 = vld [vmem:[%s6983_s1 + $0x64c] sm:$0xf]  ;;  %v3678_v18 = vor.u32 %v4543_v12, %v3675_v13  ;;  %v4623_v12 = vld [vmem:[%s6985_s3 + $0xc4] sm:$0xf0] }
  0xc5   :  { %1776 = vmatpush.bf16.msra.mxu1 %v3630_v15  ;;  %1742 = vmatmul.bf16.vlgmr.msrb.gmra.mxu2 %v5077_v11  ;;  %v3451_v11 = vld [vmem:[%s6983_s1 + $0x398] sm:$0xf0]  ;;  %v3582_v52 = vor.u32 %v4519_v45, %v3579_v57  ;;  %v4613_v57 = vld [vmem:[%s6985_s3 + $0x74] sm:$0xf0] }
  0xc6   :  { %1790 = vmatpush.bf16.msra.mxu2 %v3758_v16  ;;  %1756 = vmatmul.bf16.vlgmr.msrb.gmra.mxu3 %v5049_v0  ;;  %v4487_v0 = vld [vmem:[%s6983_s1 + $0x38c] sm:$0xf]  ;;  %v3803_v15 = vld [vmem:[%s6983_s1 + $0x658] sm:$0xf0]  ;;  %v3422_v16 = vor.u32 %v4479_v6, %v3419_v7  ;;  %v4625_v6 = vld [vmem:[%s6985_s3 + $0xd4] sm:$0xf0] }
  0xc7   :  { %1804 = vmatpush.bf16.msra.mxu3 %v3886_v20  ;;  %v3454_v51 = vor.u32 %v4487_v0, %v3451_v11  ;;  %v3403_v20 = vld [vmem:[%s6983_s1 + $0x338] sm:$0xf0]  ;;  %v3806_v22 = vor.u32 %v4575_v14, %v3803_v15  ;;  %v4567_v0 = vld [vmem:[%s6983_s1 + $0x60c] sm:$0xf]  ;;  %v6214_v11 = vpop.f32.mrf.mxu3 }
  0xc8   :  { %1763 = vmatpush.bf16.msra.mxu0 %v3486_v27  ;;  %v6181_v27 = vpop.f32.mrf.mxu2  ;;  %v3406_v30 = vor.u32 %v4475_v19, %v3403_v20  ;;  %v3771_v45 = vld [vmem:[%s6983_s1 + $0x618] sm:$0xf0]  ;;  %v4621_v19 = vld [vmem:[%s6985_s3 + $0xb4] sm:$0xf0] }
  0xc9   :  { %1777 = vmatpush.bf16.msra.mxu1 %v3614_v28  ;;  %v4571_v28 = vld [vmem:[%s6983_s1 + $0x62c] sm:$0xf] }
  0xca   :  { %1791 = vmatpush.bf16.msra.mxu2 %v3742_v29  ;;  %v3787_v29 = vld [vmem:[%s6983_s1 + $0x638] sm:$0xf0]  ;;  %v6296_v20 = vpop.f32.mrf.mxu0 }
  0xcb   :  { %1805 = vmatpush.bf16.msra.mxu3 %v3870_v33  ;;  %v3534_v33 = vor.u32 %v4507_v21, %v3531_v24 }
  0xcc   :  { %1764 = vmatpush.bf16.msra.mxu0 %v3470_v40  ;;  %v3790_v40 = vor.u32 %v4571_v28, %v3787_v29  ;;  %v4603_v28 = vld [vmem:[%s6985_s3 + $0x24] sm:$0xf0]  ;;  %v3969_v29 = vld [vmem:[%s6985_s3 + $0xa0] sm:$0xf] }
  0xcd   :  { %1778 = vmatpush.bf16.msra.mxu1 %v3598_v43  ;;  %v4535_v43 = vld [vmem:[%s6983_s1 + $0x50c] sm:$0xf]  ;;  %v3906_v31 = vor.u32 %v4603_v28, %v3905_v26  ;;  %v1825_v28 = vld [vmem:[#allocation1] sm:$0xff] }
  0xce   :  { %1792 = vmatpush.bf16.msra.mxu2 %v3726_v44  ;;  %v3643_v44 = vld [vmem:[%s6983_s1 + $0x518] sm:$0xf0] }
  0xcf   :  { %1806 = vmatpush.bf16.msra.mxu3 %v3854_v46  ;;  %v3945_v46 = vld [vmem:[%s6985_s3 + $0x70] sm:$0xf]  ;;  %v6264_v7 = vpop.f32.mrf.mxu3 }
  0xd0   :  { %1765 = vmatpush.bf16.msra.mxu0 %v3454_v51  ;;  %v3646_v51 = vor.u32 %v4535_v43, %v3643_v44  ;;  %v6243_v60 = vpop.f32.mrf.mxu2 }
  0xd1   :  { %1779 = vmatpush.bf16.msra.mxu1 %v3582_v52  ;;  %v3774_v52 = vor.u32 %v4567_v0, %v3771_v45 }
  0xd2   :  { %1793 = vmatpush.bf16.msra.mxu2 %v3710_v53  ;;  %v3946_v53 = vor.u32 %v4613_v57, %v3945_v46  ;;  %v3962_v46 = vor.u32 %v4617_v38, %v3961_v36  ;;  %v3889_v57 = vld [vmem:[%s6985_s3] sm:$0xf] }
  0xd3   :  { %1807 = vmatpush.bf16.msra.mxu3 %v3838_v58  ;;  %v4001_v58 = vld [vmem:[%s6985_s3 + $0xe0] sm:$0xf] }
  0xd4   :  { %1766 = vmatpush.bf16.msra.mxu0 %v3438_v3  ;;  %v4002_v1 = vor.u32 %v4627_v59, %v4001_v58  ;;  %v3929_v3 = vld [vmem:[%s6985_s3 + $0x50] sm:$0xf]  ;;  %v1464_v58 = vadd.f32 %v6181_v27, %v1450_v49 }
  0xd5   :  { %1780 = vmatpush.bf16.msra.mxu1 %v3566_v4  ;;  %v4609_v4 = vld [vmem:[%s6985_s3 + $0x54] sm:$0xf0] }
  0xd6   :  { %1794 = vmatpush.bf16.msra.mxu2 %v3694_v5  ;;  %v6254_v5 = vpop.f32.mrf.mxu1 }
  0xd7   :  { %1808 = vmatpush.bf16.msra.mxu3 %v3822_v9  ;;  %v3921_v9 = vld [vmem:[%s6985_s3 + $0x40] sm:$0xf]  ;;  %v1533_v21 = vpop.f32.mrf.mxu3 }
  0xd8   :  { %1767 = vmatpush.bf16.msra.mxu0 %v3422_v16  ;;  %v3922_v13 = vor.u32 %v4607_v10, %v3921_v9  ;;  %v6282_v14 = vpop.f32.mrf.mxu2  ;;  %v3913_v16 = vld [vmem:[%s6985_s3 + $0x30] sm:$0xf]  ;;  %v4608_v10 = vld [vmem:[%s6985_s3 + $0x54] sm:$0xf] }
  0xd9   :  { %1781 = vmatpush.bf16.msra.mxu1 %v3550_v17  ;;  %v4605_v17 = vld [vmem:[%s6985_s3 + $0x34] sm:$0xf0] }
  0xda   :  { %1795 = vmatpush.bf16.msra.mxu2 %v3678_v18  ;;  %v3977_v18 = vld [vmem:[%s6985_s3 + $0xb0] sm:$0xf]  ;;  %v3914_v24 = vor.u32 %v4605_v17, %v3913_v16 }
  0xdb   :  { %1809 = vmatpush.bf16.msra.mxu3 %v3806_v22  ;;  %v3978_v25 = vor.u32 %v4621_v19, %v3977_v18 }
  0xdc   :  { %1768 = vmatpush.bf16.msra.mxu0 %v3406_v30  ;;  %v4619_v30 = vld [vmem:[%s6985_s3 + $0xa4] sm:$0xf0] }
  0xdd   :  { %1782 = vmatpush.bf16.msra.mxu1 %v3534_v33  ;;  %v3970_v33 = vor.u32 %v4619_v30, %v3969_v29 }
  0xde   :  { %1796 = vmatpush.bf16.msra.mxu2 %v3662_v34  ;;  %v6298_v22 = vpop.f32.mrf.mxu1  ;;  %v3897_v34 = vld [vmem:[%s6985_s3 + $0x10] sm:$0xf] }
  0xdf   :  { %1810 = vmatpush.bf16.msra.mxu3 %v3790_v40  ;;  %v3898_v0 = vor.u32 %v4601_v35, %v3897_v34  ;;  %v1535_v45 = vpop.f32.mrf.mxu3 }
  0xe0   :  { %1769 = vmatpush.bf16.msra.mxu0 %v3390_v47  ;;  %v6324_v40 = vpop.f32.mrf.mxu2  ;;  %v1547_v43 = vpop.f32.mrf.mxu0  ;;  %v4599_v47 = vld [vmem:[%s6985_s3 + $0x4] sm:$0xf0] }
  0xe1   :  { %1783 = vmatpush.bf16.msra.mxu1 %v3518_v50  ;;  %v4615_v50 = vld [vmem:[%s6985_s3 + $0x84] sm:$0xf0]  ;;  %v1548_v2 = vadd.f32 %v1547_v43, %v1533_v21  ;;  %v4604_v43 = vld [vmem:[%s6985_s3 + $0x34] sm:$0xf] }
  0xe2   :  { %1797 = vmatpush.bf16.msra.mxu2 %v3646_v51  ;;  %v4612_v51 = vld [vmem:[%s6985_s3 + $0x74] sm:$0xf]  ;;  %v3954_v55 = vor.u32 %v4615_v50, %v3953_v48 }
  0xe3   :  { %1811 = vmatpush.bf16.msra.mxu3 %v3774_v52  ;;  %1770 = vmatmul.bf16.vlgmr.msra.gmra.mxu0 %v5104_v23  ;;  %v3993_v23 = vld [vmem:[%s6985_s3 + $0xd0] sm:$0xf]  ;;  %v3947_v52 = vld [vmem:[%s6985_s3 + $0x78] sm:$0xf0] }
  0xe4   :  { %2269 = vmatpush.bf16.msrb.mxu0 %v3946_v53  ;;  %1784 = vmatmul.bf16.vlgmr.msra.gmra.mxu1 %v5254_v37  ;;  %v3930_v37 = vor.u32 %v4609_v4, %v3929_v3  ;;  %v4628_v53 = vld [vmem:[%s6985_s3 + $0xf4] sm:$0xf]  ;;  %v3950_v56 = vor.u32 %v4612_v51, %v3947_v52  ;;  %v4626_v4 = vld [vmem:[%s6985_s3 + $0xe4] sm:$0xf] }
  0xe5   :  { %2283 = vmatpush.bf16.msrb.mxu1 %v4010_v54  ;;  %1798 = vmatmul.bf16.vlgmr.msra.gmra.mxu2 %v5267_v42  ;;  %v3994_v42 = vor.u32 %v4625_v6, %v3993_v23  ;;  %v3890_v54 = vor.u32 %v4599_v47, %v3889_v57  ;;  %v4014_v59 = vor.u32 %v4628_v53, %v4011_v62  ;;  %v4003_v23 = vld [vmem:[%s6985_s3 + $0xe8] sm:$0xf0]  ;;  %v4602_v53 = vld [vmem:[%s6985_s3 + $0x24] sm:$0xf] }
  0xe6   :  { %1812 = vmatmul.bf16.vlgmr.msra.gmra.mxu3 %v5265_v41  ;;  %v3985_v41 = vld [vmem:[%s6985_s3 + $0xc0] sm:$0xf]  ;;  %v1561_v44 = vpop.f32.mrf.mxu1  ;;  %v4006_v9 = vor.u32 %v4626_v4, %v4003_v23  ;;  %v3907_v62 = vld [vmem:[%s6985_s3 + $0x28] sm:$0xf0]  ;;  %v4600_v23 = vld [vmem:[%s6985_s3 + $0x14] sm:$0xf] }
  0xe7   :  { %v3986_v15 = vor.u32 %v4623_v12, %v3985_v41  ;;  %v1562_v6 = vadd.f32 %v1561_v44, %v1548_v2  ;;  %v3931_v41 = vld [vmem:[%s6985_s3 + $0x58] sm:$0xf0]  ;;  %v1452_v12 = vadd.f32 %v6203_v39, %v6192_v32  ;;  %v4606_v32 = vld [vmem:[%s6985_s3 + $0x44] sm:$0xf]  ;;  %v3923_v39 = vld [vmem:[%s6985_s3 + $0x48] sm:$0xf0] }
  0xe8   :  { %2270 = vmatpush.bf16.msrb.mxu0 %v3938_v61  ;;  %v4610_v61 = vld [vmem:[%s6985_s3 + $0x64] sm:$0xf]  ;;  %v1575_v3 = vpop.f32.mrf.mxu2  ;;  %v1549_v27 = vpop.f32.mrf.mxu0  ;;  %v3934_v17 = vor.u32 %v4608_v10, %v3931_v41  ;;  %v3915_v44 = vld [vmem:[%s6985_s3 + $0x38] sm:$0xf0] }
  0xe9   :  { %2284 = vmatpush.bf16.msrb.mxu1 %v4002_v1  ;;  %v3939_v1 = vld [vmem:[%s6985_s3 + $0x68] sm:$0xf0]  ;;  %v1576_v16 = vadd.f32 %v1575_v3, %v1562_v6  ;;  %v1550_v19 = vadd.f32 %v1549_v27, %v1535_v45  ;;  %v1829_v45 = vpack.i.b16 %v1825_v28, %v1825_v28  ;;  %v3918_v51 = vor.u32 %v4604_v43, %v3915_v44  ;;  %v3899_v6 = vld [vmem:[%s6985_s3 + $0x18] sm:$0xf0] }
  0xea   :  { %v3942_v8 = vor.u32 %v4610_v61, %v3939_v1  ;;  %v3910_v61 = vor.u32 %v4602_v53, %v3907_v62  ;;  %v4049_v62 = vld [vmem:[%s6985_s3 + $0x140] sm:$0xf] }
  0xeb   :  { %v1831_v2 = vperm.slane %v1829_v45, 0  ;;  %v4065_v45 = vld [vmem:[%s6985_s3 + $0x160] sm:$0xf] }
  0xec   :  { %2271 = vmatpush.bf16.msrb.mxu0 %v3930_v37  ;;  %v1478_v37 = vadd.f32 %v6214_v11, %v1464_v58  ;;  %v3995_v11 = vld [vmem:[%s6985_s3 + $0xd8] sm:$0xf0] }
  0xed   :  { %2285 = vmatpush.bf16.msrb.mxu1 %v3994_v42 }
  0xee   :  { %v1563_v42 = vpop.f32.mrf.mxu1  ;;  %v1492_v18 = vadd.f32 %v6245_v63, %v1478_v37  ;;  %v3987_v63 = vld [vmem:[%s6985_s3 + $0xc8] sm:$0xf0]  ;;  %v3963_v37 = vld [vmem:[%s6985_s3 + $0x98] sm:$0xf0] }
  0xef   :  { %v1564_v35 = vadd.f32 %v1563_v42, %v1550_v19 }
  0xf0   :  { %2272 = vmatpush.bf16.msrb.mxu0 %v3922_v13  ;;  %v1589_v13 = vpop.f32.mrf.mxu3  ;;  %v1577_v29 = vpop.f32.mrf.mxu2  ;;  %v1506_v34 = vadd.f32 %v6254_v5, %v1492_v18  ;;  %v4620_v5 = vld [vmem:[%s6985_s3 + $0xb4] sm:$0xf] }
  0xf1   :  { %2286 = vmatpush.bf16.msrb.mxu1 %v3986_v15  ;;  %v4624_v15 = vld [vmem:[%s6985_s3 + $0xd4] sm:$0xf]  ;;  %v1590_v26 = vadd.f32 %v1589_v13, %v1576_v16  ;;  %v1578_v57 = vadd.f32 %v1577_v29, %v1564_v35  ;;  %v4614_v16 = vld [vmem:[%s6985_s3 + $0x84] sm:$0xf]  ;;  %v4645_v35 = vld [vmem:[%s6985_s3 + $0x174] sm:$0xf0] }
  0xf2   :  { %v3998_v21 = vor.u32 %v4624_v15, %v3995_v11  ;;  %v1520_v52 = vadd.f32 %v6282_v14, %v1506_v34  ;;  %v3891_v11 = vld [vmem:[%s6985_s3 + $0x8] sm:$0xf0]  ;;  %v4073_v34 = vld [vmem:[%s6985_s3 + $0x170] sm:$0xf] }
  0xf4   :  { %2273 = vmatpush.bf16.msrb.mxu0 %v3914_v24  ;;  %v1466_v24 = vadd.f32 %v6243_v60, %v1452_v12  ;;  %v3902_v12 = vor.u32 %v4600_v23, %v3899_v6  ;;  %v4653_v6 = vld [vmem:[%s6985_s3 + $0x1b4] sm:$0xf0] }
  0xf5   :  { %2287 = vmatpush.bf16.msrb.mxu1 %v3978_v25  ;;  %v4622_v25 = vld [vmem:[%s6985_s3 + $0xc4] sm:$0xf] }
  0xf6   :  { %v3990_v38 = vor.u32 %v4622_v25, %v3987_v63 }
  0xf8   :  { %2274 = vmatpush.bf16.msrb.mxu0 %v3906_v31  ;;  %v1826_v31 = vld [vmem:[#allocation1 + $0x9] sm:$0xff]  ;;  %v1591_v50 = vpop.f32.mrf.mxu3 }
  0xf9   :  { %2288 = vmatpush.bf16.msrb.mxu1 %v3970_v33  ;;  %v3926_v33 = vor.u32 %v4606_v32, %v3923_v39  ;;  %v1832_v48 = vpack.i.b16 %v1826_v31, %v1826_v31  ;;  %v1592_v14 = vadd.f32 %v1591_v50, %v1578_v57  ;;  %v4641_v50 = vld [vmem:[%s6985_s3 + $0x154] sm:$0xf0] }
  0xfc   :  { %2275 = vmatpush.bf16.msrb.mxu0 %v3898_v0  ;;  %v1480_v0 = vadd.f32 %v6264_v7, %v1466_v24 }
  0xfd   :  { %2289 = vmatpush.bf16.msrb.mxu1 %v3962_v46  ;;  %v3979_v46 = vld [vmem:[%s6985_s3 + $0xb8] sm:$0xf0] }
  0xfe   :  { %v1494_v49 = vadd.f32 %v6296_v20, %v1480_v0  ;;  %v3982_v7 = vor.u32 %v4620_v5, %v3979_v46  ;;  %v4618_v20 = vld [vmem:[%s6985_s3 + $0xa4] sm:$0xf]  ;;  %v4643_v5 = vld [vmem:[%s6985_s3 + $0x164] sm:$0xf0]  ;;  %v4129_v46 = vld [vmem:[%s6985_s3 + $0x1e0] sm:$0xf] }
  0xff   :  { %v4066_v57 = vor.u32 %v4643_v5, %v4065_v45  ;;  %v4067_v45 = vld [vmem:[%s6985_s3 + $0x168] sm:$0xf0]  ;;  %v4658_v5 = vld [vmem:[%s6985_s3 + $0x1e4] sm:$0xf] }
 0x100   :  { %2276 = vmatpush.bf16.msrb.mxu0 %v3890_v54  ;;  %v1603_v30 = vpop.f32.mrf.mxu0  ;;  %v3971_v54 = vld [vmem:[%s6985_s3 + $0xa8] sm:$0xf0]  ;;  %v1508_v58 = vadd.f32 %v6298_v22, %v1494_v49  ;;  %v4616_v22 = vld [vmem:[%s6985_s3 + $0x94] sm:$0xf]  ;;  %v4057_v49 = vld [vmem:[%s6985_s3 + $0x150] sm:$0xf] }
 0x101   :  { %2290 = vmatpush.bf16.msrb.mxu1 %v3954_v55  ;;  %v1604_v36 = vadd.f32 %v1603_v30, %v1590_v26  ;;  %v1617_v60 = vpop.f32.mrf.mxu1  ;;  %v3974_v4 = vor.u32 %v4618_v20, %v3971_v54  ;;  %v3966_v15 = vor.u32 %v4616_v22, %v3963_v37  ;;  %v4113_v20 = vld [vmem:[%s6985_s3 + $0x1c0] sm:$0xf]  ;;  %v4655_v54 = vld [vmem:[%s6985_s3 + $0x1c4] sm:$0xf0] }
 0x102   :  { %v1522_v27 = vadd.f32 %v6324_v40, %v1508_v58  ;;  %v4598_v40 = vld [vmem:[%s6985_s3 + $0x4] sm:$0xf]  ;;  %v4114_v58 = vor.u32 %v4655_v54, %v4113_v20  ;;  %v4033_v22 = vld [vmem:[%s6985_s3 + $0x120] sm:$0xf]  ;;  %v4635_v37 = vld [vmem:[%s6985_s3 + $0x124] sm:$0xf0] }
 0x103   :  { %v1618_v47 = vadd.f32 %v1617_v60, %v1604_v36  ;;  %v3894_v39 = vor.u32 %v4598_v40, %v3891_v11  ;;  %v4137_v36 = vld [vmem:[%s6985_s3 + $0x1f0] sm:$0xf]  ;;  %v4074_v60 = vor.u32 %v4645_v35, %v4073_v34  ;;  %v4633_v40 = vld [vmem:[%s6985_s3 + $0x114] sm:$0xf0]  ;;  %v4139_v34 = vld [vmem:[%s6985_s3 + $0x1f8] sm:$0xf0] }
 0x104   :  { %2325 = vmatpush.bf16.msra.mxu0 %v3950_v56  ;;  %v1834_v56 = vperm.slane %v1832_v48, 0  ;;  %v4089_v11 = vld [vmem:[%s6985_s3 + $0x190] sm:$0xf] }
 0x105   :  { %2339 = vmatpush.bf16.msra.mxu1 %v4014_v59  ;;  %v1818_v55 = vpack.c.bf16 %v1618_v47, %v1520_v52  ;;  %2297 = vmatpush.bf16.msrb.mxu2 %v4074_v60  ;;  %v4659_v47 = vld [vmem:[%s6985_s3 + $0x1e4] sm:$0xf0]  ;;  %v4058_v52 = vor.u32 %v4641_v50, %v4057_v49  ;;  %v6582_v60 = vld [vmem:[#allocation1 + $0x12] sm:$0xff] }
 0x106   :  { %v1850_v10 = vunpack.c.l.bf16 %v1834_v56  ;;  %v4130_v48 = vor.u32 %v4659_v47, %v4129_v46  ;;  %v6593_v46 = vld [vmem:[#allocation1 + $0x1b] sm:$0xff] }
 0x107   :  { %v1841_v42 = vunpack.c.l.bf16 %v1818_v55 }
 0x108   :  { %2326 = vmatpush.bf16.msra.mxu0 %v3942_v8  ;;  %v1605_v59 = vpop.f32.mrf.mxu0  ;;  %v1849_v8 = vunpack.c.l.bf16 %v1831_v2  ;;  %v6460_v43 = vpop.f32.mrf.mxu2  ;;  %v4639_v2 = vld [vmem:[%s6985_s3 + $0x144] sm:$0xf0] }
 0x109   :  { %2340 = vmatpush.bf16.msra.mxu1 %v4006_v9  ;;  %v1606_v1 = vadd.f32 %v1605_v59, %v1592_v14  ;;  %v1619_v3 = vpop.f32.mrf.mxu1  ;;  %v1842_v9 = vunpack.c.h.bf16 %v1818_v55  ;;  %v6462_v0 = vpop.f32.mrf.mxu3  ;;  %2298 = vmatpush.bf16.msrb.mxu2 %v4066_v57  ;;  %v4050_v56 = vor.u32 %v4639_v2, %v4049_v62  ;;  %v2383_v57 = vld [vmem:[%s6987_s4] sm:$0x3]  ;;  %v4123_v2 = vld [vmem:[%s6985_s3 + $0x1d8] sm:$0xf0] }
 0x10a   :  { %v1853_v18 = vadd.f32 %v1849_v8, %v1841_v42  ;;  %v4097_v42 = vld [vmem:[%s6985_s3 + $0x1a0] sm:$0xf]  ;;  %2385 = vst [vmem:[#allocation1] ss:$9 sm:$0xff] %v2383_v57  ;;  %v4083_v57 = vld [vmem:[%s6985_s3 + $0x188] sm:$0xf0] }
 0x10b   :  { %v1620_v41 = vadd.f32 %v1619_v3, %v1606_v1  ;;  %v1854_v19 = vadd.f32 %v1850_v10, %v1842_v9  ;;  %v4041_v1 = vld [vmem:[%s6985_s3 + $0x130] sm:$0xf]  ;;  %v4637_v3 = vld [vmem:[%s6985_s3 + $0x134] sm:$0xf0] }
 0x10c   :  { %2327 = vmatpush.bf16.msra.mxu0 %v3934_v17  ;;  %v3955_v17 = vld [vmem:[%s6985_s3 + $0x88] sm:$0xf0]  ;;  %v1873_v26 = vmax.f32 %v1853_v18, 0.0  ;;  %v4042_v23 = vor.u32 %v4637_v3, %v4041_v1  ;;  %v4649_v18 = vld [vmem:[%s6985_s3 + $0x194] sm:$0xf0]  ;;  %v1646_v3 = vadd.f32 %v6462_v0, %v6460_v43 }
 0x10d   :  { %2341 = vmatpush.bf16.msra.mxu1 %v3998_v21  ;;  %v1820_v13 = vpack.c.bf16 %v1620_v41, %v1522_v27  ;;  %v3958_v63 = vor.u32 %v4614_v16, %v3955_v17  ;;  %v1874_v28 = vmax.f32 %v1854_v19, 0.0  ;;  %2299 = vmatpush.bf16.msrb.mxu2 %v4058_v52  ;;  %v4651_v41 = vld [vmem:[%s6985_s3 + $0x1a4] sm:$0xf0]  ;;  %v4090_v19 = vor.u32 %v4649_v18, %v4089_v11  ;;  %v4059_v52 = vld [vmem:[%s6985_s3 + $0x158] sm:$0xf0] }
 0x10e   :  { %v4654_v1 = vld [vmem:[%s6985_s3 + $0x1c4] sm:$0xf]  ;;  %v4652_v43 = vld [vmem:[%s6985_s3 + $0x1b4] sm:$0xf] }
 0x10f   :  { %v1845_v21 = vunpack.c.l.bf16 %v1820_v13  ;;  %v1846_v32 = vunpack.c.h.bf16 %v1820_v13 }
 0x110   :  { %2328 = vmatpush.bf16.msra.mxu0 %v3926_v33  ;;  %v6500_v14 = vpop.f32.mrf.mxu2 }
 0x111   :  { %2342 = vmatpush.bf16.msra.mxu1 %v3990_v38  ;;  %v1857_v24 = vadd.f32 %v1849_v8, %v1845_v21  ;;  %v1858_v25 = vadd.f32 %v1850_v10, %v1846_v32  ;;  %v4661_v38 = vld [vmem:[%s6985_s3 + $0x1f4] sm:$0xf0]  ;;  %v6502_v55 = vpop.f32.mrf.mxu3  ;;  %2300 = vmatpush.bf16.msrb.mxu2 %v4050_v56  ;;  %v4034_v10 = vor.u32 %v4635_v37, %v4033_v22  ;;  %v4017_v21 = vld [vmem:[%s6985_s3 + $0x100] sm:$0xf]  ;;  %v4631_v32 = vld [vmem:[%s6985_s3 + $0x104] sm:$0xf0] }
 0x112   :  { %v4138_v44 = vor.u32 %v4661_v38, %v4137_v36  ;;  %v4638_v56 = vld [vmem:[%s6985_s3 + $0x144] sm:$0xf]  ;;  %v4636_v37 = vld [vmem:[%s6985_s3 + $0x134] sm:$0xf] }
 0x113   :  { %v1877_v29 = vmax.f32 %v1857_v24, 0.0  ;;  %v1878_v30 = vmax.f32 %v1858_v25, 0.0  ;;  %v4018_v25 = vor.u32 %v4631_v32, %v4017_v21 }
 0x114   :  { %2329 = vmatpush.bf16.msra.mxu0 %v3918_v51  ;;  %2311 = vmatpush.bf16.msrb.mxu3 %v4138_v44  ;;  %v4121_v51 = vld [vmem:[%s6985_s3 + $0x1d0] sm:$0xf]  ;;  %v4642_v44 = vld [vmem:[%s6985_s3 + $0x164] sm:$0xf] }
 0x115   :  { %2343 = vmatpush.bf16.msra.mxu1 %v3982_v7  ;;  %v1881_v31 = vpack.c.bf16 %v1877_v29, %v1873_v26  ;;  %v1882_v33 = vpack.c.bf16 %v1878_v30, %v1874_v28  ;;  %v4657_v7 = vld [vmem:[%s6985_s3 + $0x1d4] sm:$0xf0]  ;;  %2301 = vmatpush.bf16.msrb.mxu2 %v4042_v23  ;;  %v4644_v26 = vld [vmem:[%s6985_s3 + $0x174] sm:$0xf]  ;;  %v4070_v47 = vor.u32 %v4642_v44, %v4067_v45  ;;  %v4115_v23 = vld [vmem:[%s6985_s3 + $0x1c8] sm:$0xf0] }
 0x116   :  { %v4122_v53 = vor.u32 %v4657_v7, %v4121_v51  ;;  %v4640_v51 = vld [vmem:[%s6985_s3 + $0x154] sm:$0xf] }
 0x117   :  { %2277 = vmatmul.bf16.vlgmr.msrb.gmra.mxu0 %v1881_v31  ;;  %2291 = vmatmul.bf16.vlgmr.msrb.gmra.mxu1 %v1882_v33  ;;  %v4656_v7 = vld [vmem:[%s6985_s3 + $0x1d4] sm:$0xf]  ;;  %v4062_v62 = vor.u32 %v4640_v51, %v4059_v52  ;;  %v1835_v52 = vpack.i.b16 %v6582_v60, %v6582_v60 }
 0x118   :  { %2330 = vmatpush.bf16.msra.mxu0 %v3910_v61  ;;  %2312 = vmatpush.bf16.msrb.mxu3 %v4130_v48  ;;  %v4131_v48 = vld [vmem:[%s6985_s3 + $0x1e8] sm:$0xf0]  ;;  %v4126_v20 = vor.u32 %v4656_v7, %v4123_v2 }
 0x119   :  { %2344 = vmatpush.bf16.msra.mxu1 %v3974_v4  ;;  %v4105_v4 = vld [vmem:[%s6985_s3 + $0x1b0] sm:$0xf]  ;;  %2302 = vmatpush.bf16.msrb.mxu2 %v4034_v10  ;;  %v4134_v49 = vor.u32 %v4658_v5, %v4131_v48  ;;  %v4019_v5 = vld [vmem:[%s6985_s3 + $0x108] sm:$0xf0] }
 0x11a   :  { %v4106_v27 = vor.u32 %v4653_v6, %v4105_v4 }
 0x11c   :  { %2331 = vmatpush.bf16.msra.mxu0 %v3902_v12  ;;  %2313 = vmatpush.bf16.msrb.mxu3 %v4122_v53  ;;  %v4098_v12 = vor.u32 %v4651_v41, %v4097_v42  ;;  %v4043_v42 = vld [vmem:[%s6985_s3 + $0x138] sm:$0xf0] }
 0x11d   :  { %2345 = vmatpush.bf16.msra.mxu1 %v3966_v15  ;;  %v4025_v15 = vld [vmem:[%s6985_s3 + $0x110] sm:$0xf]  ;;  %v4046_v10 = vor.u32 %v4636_v37, %v4043_v42  ;;  %v4107_v41 = vld [vmem:[%s6985_s3 + $0x1b8] sm:$0xf0] }
 0x11e   :  { %v4026_v17 = vor.u32 %v4633_v40, %v4025_v15  ;;  %v4035_v15 = vld [vmem:[%s6985_s3 + $0x128] sm:$0xf0]  ;;  %v4110_v11 = vor.u32 %v4652_v43, %v4107_v41 }
 0x120   :  { %2332 = vmatpush.bf16.msra.mxu0 %v3894_v39  ;;  %v6504_v59 = vpop.f32.mrf.mxu0  ;;  %2314 = vmatpush.bf16.msrb.mxu3 %v4114_v58  ;;  %v4081_v39 = vld [vmem:[%s6985_s3 + $0x180] sm:$0xf]  ;;  %v4051_v58 = vld [vmem:[%s6985_s3 + $0x148] sm:$0xf0] }
 0x121   :  { %2346 = vmatpush.bf16.msra.mxu1 %v3958_v63  ;;  %v6506_v61 = vpop.f32.mrf.mxu1  ;;  %2303 = vmatpush.bf16.msrb.mxu2 %v4026_v17  ;;  %v4647_v63 = vld [vmem:[%s6985_s3 + $0x184] sm:$0xf0]  ;;  %v4054_v4 = vor.u32 %v4638_v56, %v4051_v58  ;;  %v1660_v0 = vadd.f32 %v6504_v59, %v1646_v3  ;;  %v4650_v17 = vld [vmem:[%s6985_s3 + $0x1a4] sm:$0xf]  ;;  %v4099_v59 = vld [vmem:[%s6985_s3 + $0x1a8] sm:$0xf0] }
 0x122   :  { %v4082_v30 = vor.u32 %v4647_v63, %v4081_v39  ;;  %v4102_v39 = vor.u32 %v4650_v17, %v4099_v59  ;;  %v1648_v63 = vadd.f32 %v6502_v55, %v6500_v14 }
 0x124   :  { %2315 = vmatpush.bf16.msrb.mxu3 %v4106_v27  ;;  %v4118_v27 = vor.u32 %v4654_v1, %v4115_v23  ;;  %v1837_v1 = vperm.slane %v1835_v52, 0 }
 0x125   :  { %2304 = vmatpush.bf16.msrb.mxu2 %v4018_v25  ;;  %v4632_v25 = vld [vmem:[%s6985_s3 + $0x114] sm:$0xf] }
 0x126   :  { %v1851_v37 = vunpack.c.l.bf16 %v1837_v1  ;;  %v4177_v1 = vld [vmem:[%s6988_s5 + $0x40] sm:$0xf] }
 0x127   :  { %2333 = vmatmul.bf16.vlgmr.msra.gmra.mxu0 %v1881_v31  ;;  %2347 = vmatmul.bf16.vlgmr.msra.gmra.mxu1 %v1882_v33  ;;  %v4075_v31 = vld [vmem:[%s6985_s3 + $0x178] sm:$0xf0]  ;;  %v4660_v33 = vld [vmem:[%s6985_s3 + $0x1f4] sm:$0xf] }
 0x128   :  { %v6520_v8 = vpop.f32.mrf.mxu2  ;;  %v6536_v13 = vpop.f32.mrf.mxu0  ;;  %2316 = vmatpush.bf16.msrb.mxu3 %v4098_v12  ;;  %v4078_v35 = vor.u32 %v4644_v26, %v4075_v31  ;;  %v4142_v36 = vor.u32 %v4660_v33, %v4139_v34  ;;  %v4634_v12 = vld [vmem:[%s6985_s3 + $0x124] sm:$0xf]  ;;  %v1674_v26 = vadd.f32 %v6506_v61, %v1660_v0  ;;  %v4027_v31 = vld [vmem:[%s6985_s3 + $0x118] sm:$0xf0]  ;;  %v4648_v33 = vld [vmem:[%s6985_s3 + $0x194] sm:$0xf] }
 0x129   :  { %v6531_v9 = vpop.f32.mrf.mxu3  ;;  %v6547_v16 = vpop.f32.mrf.mxu1  ;;  %v4038_v32 = vor.u32 %v4634_v12, %v4035_v15  ;;  %v4091_v34 = vld [vmem:[%s6985_s3 + $0x198] sm:$0xf0]  ;;  %v4030_v14 = vor.u32 %v4632_v25, %v4027_v31  ;;  %v4630_v61 = vld [vmem:[%s6985_s3 + $0x104] sm:$0xf] }
 0x12a   :  { %2353 = vmatpush.bf16.msra.mxu2 %v4078_v35  ;;  %v4094_v55 = vor.u32 %v4648_v33, %v4091_v34  ;;  %v1688_v44 = vadd.f32 %v6520_v8, %v1674_v26  ;;  %v4022_v7 = vor.u32 %v4630_v61, %v4019_v5  ;;  %v4676_v26 = vld [vmem:[%s6988_s5 + $0x74] sm:$0xf]  ;;  %v4195_v5 = vld [vmem:[%s6988_s5 + $0x68] sm:$0xf0] }
 0x12b   :  { %v4692_v34 = vld [vmem:[%s6988_s5 + $0xf4] sm:$0xf] }
 0x12c   :  { %2317 = vmatpush.bf16.msrb.mxu3 %v4090_v19 }
 0x12e   :  { %2354 = vmatpush.bf16.msra.mxu2 %v4070_v47 }
 0x130   :  { %v6561_v24 = vpop.f32.mrf.mxu2  ;;  %2318 = vmatpush.bf16.msrb.mxu3 %v4082_v30 }
 0x131   :  { %v6569_v28 = vpop.f32.mrf.mxu3 }
 0x132   :  { %2355 = vmatpush.bf16.msra.mxu2 %v4062_v62  ;;  %v1702_v62 = vadd.f32 %v6531_v9, %v1688_v44  ;;  %v4691_v44 = vld [vmem:[%s6988_s5 + $0xe4] sm:$0xf0] }
 0x134   :  { %2367 = vmatpush.bf16.msra.mxu3 %v4142_v36  ;;  %v1662_v36 = vadd.f32 %v6536_v13, %v1648_v63  ;;  %v4646_v13 = vld [vmem:[%s6985_s3 + $0x184] sm:$0xf]  ;;  %v4693_v63 = vld [vmem:[%s6988_s5 + $0xf4] sm:$0xf0] }
 0x136   :  { %2356 = vmatpush.bf16.msra.mxu2 %v4054_v4  ;;  %v1676_v48 = vadd.f32 %v6547_v16, %v1662_v36 }
 0x138   :  { %2368 = vmatpush.bf16.msra.mxu3 %v4134_v49  ;;  %v1690_v16 = vadd.f32 %v6561_v24, %v1676_v48  ;;  %v4259_v48 = vld [vmem:[%s6988_s5 + $0xe8] sm:$0xf0] }
 0x13a   :  { %2357 = vmatpush.bf16.msra.mxu2 %v4046_v10 }
 0x13c   :  { %2369 = vmatpush.bf16.msra.mxu3 %v4126_v20  ;;  %v1838_v20 = vpack.i.b16 %v6593_v46, %v6593_v46 }
 0x13e   :  { %2358 = vmatpush.bf16.msra.mxu2 %v4038_v32  ;;  %v1840_v4 = vperm.slane %v1838_v20, 0  ;;  %v4677_v32 = vld [vmem:[%s6988_s5 + $0x74] sm:$0xf0] }
 0x140   :  { %v6571_v29 = vpop.f32.mrf.mxu0  ;;  %2370 = vmatpush.bf16.msra.mxu3 %v4118_v27  ;;  %v1852_v24 = vunpack.c.l.bf16 %v1840_v4 }
 0x141   :  { %v1729_v38 = vpop.f32.mrf.mxu1  ;;  %v1716_v58 = vadd.f32 %v6571_v29, %v1702_v62  ;;  %v4187_v62 = vld [vmem:[%s6988_s5 + $0x58] sm:$0xf0] }
 0x142   :  { %2359 = vmatpush.bf16.msra.mxu2 %v4030_v14  ;;  %v4675_v14 = vld [vmem:[%s6988_s5 + $0x64] sm:$0xf0] }
 0x144   :  { %2371 = vmatpush.bf16.msra.mxu3 %v4110_v11 }
 0x146   :  { %2360 = vmatpush.bf16.msra.mxu2 %v4022_v7  ;;  %v4689_v7 = vld [vmem:[%s6988_s5 + $0xd4] sm:$0xf0] }
 0x148   :  { %v1743_v50 = vpop.f32.mrf.mxu2  ;;  %v6613_v54 = vpop.f32.mrf.mxu0  ;;  %2372 = vmatpush.bf16.msra.mxu3 %v4102_v39  ;;  %v4265_v39 = vld [vmem:[%s6988_s5 + $0xf0] sm:$0xf] }
 0x149   :  { %v1757_v53 = vpop.f32.mrf.mxu3  ;;  %v1731_v6 = vpop.f32.mrf.mxu1  ;;  %v1744_v22 = vadd.f32 %v1743_v50, %v1729_v38  ;;  %v4266_v31 = vor.u32 %v4693_v63, %v4265_v39  ;;  %v4225_v39 = vld [vmem:[%s6988_s5 + $0xa0] sm:$0xf] }
 0x14b   :  { %v1758_v18 = vadd.f32 %v1757_v53, %v1744_v22  ;;  %v4086_v53 = vor.u32 %v4646_v13, %v4083_v57  ;;  %2622 = vmatpush.bf16.msrb.mxu1 %v4266_v31 }
 0x14c   :  { %2373 = vmatpush.bf16.msra.mxu3 %v4094_v55  ;;  %v4257_v55 = vld [vmem:[%s6988_s5 + $0xe0] sm:$0xf] }
 0x14d   :  { %v4258_v13 = vor.u32 %v4691_v44, %v4257_v55  ;;  %v4665_v55 = vld [vmem:[%s6988_s5 + $0x14] sm:$0xf0] }
 0x14f   :  { %2623 = vmatpush.bf16.msrb.mxu1 %v4258_v13  ;;  %v4681_v13 = vld [vmem:[%s6988_s5 + $0x94] sm:$0xf0] }
 0x150   :  { %v1745_v40 = vpop.f32.mrf.mxu2  ;;  %2374 = vmatpush.bf16.msra.mxu3 %v4086_v53  ;;  %v4672_v53 = vld [vmem:[%s6988_s5 + $0x54] sm:$0xf] }
 0x151   :  { %v1759_v19 = vpop.f32.mrf.mxu3  ;;  %v1746_v38 = vadd.f32 %v1745_v40, %v1731_v6  ;;  %v1704_v6 = vadd.f32 %v6569_v28, %v1690_v16  ;;  %v4190_v20 = vor.u32 %v4672_v53, %v4187_v62  ;;  %v4251_v16 = vld [vmem:[%s6988_s5 + $0xd8] sm:$0xf0]  ;;  %v4145_v53 = vld [vmem:[%s6988_s5] sm:$0xf]  ;;  %v4663_v62 = vld [vmem:[%s6988_s5 + $0x4] sm:$0xf0] }
 0x153   :  { %v1760_v49 = vadd.f32 %v1759_v19, %v1746_v38  ;;  %v1718_v22 = vadd.f32 %v6613_v54, %v1704_v6  ;;  %v4201_v54 = vld [vmem:[%s6988_s5 + $0x70] sm:$0xf]  ;;  %v4193_v38 = vld [vmem:[%s6988_s5 + $0x60] sm:$0xf] }
 0x154   :  { %v4202_v25 = vor.u32 %v4677_v32, %v4201_v54  ;;  %v4194_v61 = vor.u32 %v4675_v14, %v4193_v38  ;;  %v4161_v54 = vld [vmem:[%s6988_s5 + $0x20] sm:$0xf]  ;;  %v4667_v32 = vld [vmem:[%s6988_s5 + $0x24] sm:$0xf0]  ;;  %v4153_v14 = vld [vmem:[%s6988_s5 + $0x10] sm:$0xf] }
 0x155   :  { %v4162_v63 = vor.u32 %v4667_v32, %v4161_v54 }
 0x156   :  { %2608 = vmatpush.bf16.msrb.mxu0 %v4202_v25  ;;  %v2666_v25 = vld [vmem:[%s6989_s6] sm:$0x3] }
 0x15a   :  { %2609 = vmatpush.bf16.msrb.mxu0 %v4194_v61  ;;  %v4217_v61 = vld [vmem:[%s6988_s5 + $0x90] sm:$0xf] }
 0x160   :  { %v1771_v21 = vpop.f32.mrf.mxu0 }
 0x161   :  { %v1772_v30 = vadd.f32 %v1771_v21, %v1758_v18  ;;  %v1785_v35 = vpop.f32.mrf.mxu1 }
 0x163   :  { %v1786_v45 = vadd.f32 %v1785_v35, %v1772_v30  ;;  %v4203_v30 = vld [vmem:[%s6988_s5 + $0x78] sm:$0xf0] }
 0x164   :  { %v4206_v33 = vor.u32 %v4676_v26, %v4203_v30  ;;  %v4267_v35 = vld [vmem:[%s6988_s5 + $0xf8] sm:$0xf0]  ;;  %v4683_v26 = vld [vmem:[%s6988_s5 + $0xa4] sm:$0xf0]  ;;  %v4666_v30 = vld [vmem:[%s6988_s5 + $0x24] sm:$0xf] }
 0x165   :  { %v4270_v36 = vor.u32 %v4692_v34, %v4267_v35  ;;  %v4226_v31 = vor.u32 %v4683_v26, %v4225_v39  ;;  %v4682_v34 = vld [vmem:[%s6988_s5 + $0xa4] sm:$0xf] }
 0x168   :  { %v1799_v47 = vpop.f32.mrf.mxu2  ;;  %v1773_v8 = vpop.f32.mrf.mxu0 }
 0x169   :  { %v1800_v50 = vadd.f32 %v1799_v47, %v1786_v45  ;;  %v1813_v51 = vpop.f32.mrf.mxu3  ;;  %v1774_v56 = vadd.f32 %v1773_v8, %v1760_v49  ;;  %v1787_v3 = vpop.f32.mrf.mxu1  ;;  %v4674_v45 = vld [vmem:[%s6988_s5 + $0x64] sm:$0xf]  ;;  %v4249_v8 = vld [vmem:[%s6988_s5 + $0xd0] sm:$0xf] }
 0x16a   :  { %v4198_v57 = vor.u32 %v4674_v45, %v4195_v5  ;;  %v4690_v47 = vld [vmem:[%s6988_s5 + $0xe4] sm:$0xf]  ;;  %v4154_v5 = vor.u32 %v4665_v55, %v4153_v14 }
 0x16b   :  { %v1814_v2 = vadd.f32 %v1813_v51, %v1800_v50  ;;  %v1788_v23 = vadd.f32 %v1787_v3, %v1774_v56  ;;  %v4262_v49 = vor.u32 %v4690_v47, %v4259_v48  ;;  %v4185_v50 = vld [vmem:[%s6988_s5 + $0x50] sm:$0xf]  ;;  %v4673_v51 = vld [vmem:[%s6988_s5 + $0x54] sm:$0xf0]  ;;  %v4688_v56 = vld [vmem:[%s6988_s5 + $0xd4] sm:$0xf] }
 0x16c   :  { %v4186_v52 = vor.u32 %v4673_v51, %v4185_v50  ;;  %v4671_v3 = vld [vmem:[%s6988_s5 + $0x44] sm:$0xf0]  ;;  %v4155_v47 = vld [vmem:[%s6988_s5 + $0x18] sm:$0xf0]  ;;  %v4218_v50 = vor.u32 %v4681_v13, %v4217_v61 }
 0x16d   :  { %v1819_v60 = vpack.c.bf16 %v1814_v2, %v1716_v58  ;;  %v4250_v2 = vor.u32 %v4689_v7, %v4249_v8  ;;  %v4254_v58 = vor.u32 %v4688_v56, %v4251_v16  ;;  %v4178_v4 = vor.u32 %v4671_v3, %v4177_v1  ;;  %v4680_v8 = vld [vmem:[%s6988_s5 + $0x94] sm:$0xf]  ;;  %v4679_v56 = vld [vmem:[%s6988_s5 + $0x84] sm:$0xf0]  ;;  %v4662_v16 = vld [vmem:[%s6988_s5 + $0x4] sm:$0xf] }
 0x16e   :  { %2610 = vmatpush.bf16.msrb.mxu0 %v4186_v52  ;;  %v4219_v52 = vld [vmem:[%s6988_s5 + $0x98] sm:$0xf0] }
 0x16f   :  { %v1843_v42 = vunpack.c.l.bf16 %v1819_v60  ;;  %v1844_v43 = vunpack.c.h.bf16 %v1819_v60  ;;  %2624 = vmatpush.bf16.msrb.mxu1 %v4250_v2  ;;  %v4241_v60 = vld [vmem:[%s6988_s5 + $0xc0] sm:$0xf]  ;;  %v4222_v7 = vor.u32 %v4680_v8, %v4219_v52  ;;  %v4707_v8 = vld [vmem:[%s6990_s7 + $0x68] sm:$0xff] }
 0x170   :  { %v1801_v27 = vpop.f32.mrf.mxu2  ;;  %v4209_v2 = vld [vmem:[%s6988_s5 + $0x80] sm:$0xf] }
 0x171   :  { %v1802_v9 = vadd.f32 %v1801_v27, %v1788_v23  ;;  %v1815_v46 = vpop.f32.mrf.mxu3  ;;  %v1855_v10 = vadd.f32 %v1851_v37, %v1843_v42  ;;  %v1856_v41 = vadd.f32 %v1852_v24, %v1844_v43  ;;  %v4687_v23 = vld [vmem:[%s6988_s5 + $0xc4] sm:$0xf0]  ;;  %v4670_v27 = vld [vmem:[%s6988_s5 + $0x44] sm:$0xf]  ;;  %v4243_v43 = vld [vmem:[%s6988_s5 + $0xc8] sm:$0xf0]  ;;  %v4210_v1 = vor.u32 %v4679_v56, %v4209_v2 }
 0x172   :  { %v4242_v6 = vor.u32 %v4687_v23, %v4241_v60  ;;  %2611 = vmatpush.bf16.msrb.mxu0 %v4178_v4  ;;  %v4678_v60 = vld [vmem:[%s6988_s5 + $0x84] sm:$0xf]  ;;  %v4211_v4 = vld [vmem:[%s6988_s5 + $0x88] sm:$0xf0]  ;;  %v4696_v2 = vld [vmem:[%s6990_s7 + $0x10] sm:$0xff] }
 0x173   :  { %v1816_v0 = vadd.f32 %v1815_v46, %v1802_v9  ;;  %v1875_v17 = vmax.f32 %v1855_v10, 0.0  ;;  %v1876_v59 = vmax.f32 %v1856_v41, 0.0  ;;  %v4179_v9 = vld [vmem:[%s6988_s5 + $0x48] sm:$0xf0]  ;;  %v4233_v41 = vld [vmem:[%s6988_s5 + $0xb0] sm:$0xf]  ;;  %v4214_v23 = vor.u32 %v4678_v60, %v4211_v4 }
 0x174   :  { %v4182_v42 = vor.u32 %v4670_v27, %v4179_v9  ;;  %2625 = vmatpush.bf16.msrb.mxu1 %v4242_v6  ;;  %v4701_v9 = vld [vmem:[%s6990_s7 + $0x38] sm:$0xff]  ;;  %v4698_v52 = vld [vmem:[%s6990_s7 + $0x20] sm:$0xff]  ;;  %v4695_v56 = vld [vmem:[%s6990_s7 + $0x8] sm:$0xff] }
 0x175   :  { %v1821_v29 = vpack.c.bf16 %v1816_v0, %v1718_v22  ;;  %v4686_v22 = vld [vmem:[%s6988_s5 + $0xc4] sm:$0xf]  ;;  %v4169_v0 = vld [vmem:[%s6988_s5 + $0x30] sm:$0xf]  ;;  %v4715_v4 = vld [vmem:[%s6991_s9 + $0x28] sm:$0xff] }
 0x176   :  { %v4716_v60 = vld [vmem:[%s6991_s9 + $0x30] sm:$0xff] }
 0x177   :  { %v1847_v12 = vunpack.c.l.bf16 %v1821_v29  ;;  %v1848_v15 = vunpack.c.h.bf16 %v1821_v29  ;;  %v4669_v29 = vld [vmem:[%s6988_s5 + $0x34] sm:$0xf0] }
 0x178   :  { %v4170_v10 = vor.u32 %v4669_v29, %v4169_v0 }
 0x179   :  { %v1859_v40 = vadd.f32 %v1851_v37, %v1847_v12  ;;  %v1860_v11 = vadd.f32 %v1852_v24, %v1848_v15  ;;  %v4246_v24 = vor.u32 %v4686_v22, %v4243_v43  ;;  %v4685_v12 = vld [vmem:[%s6988_s5 + $0xb4] sm:$0xf0]  ;;  %v4668_v15 = vld [vmem:[%s6988_s5 + $0x34] sm:$0xf] }
 0x17a   :  { %2612 = vmatpush.bf16.msrb.mxu0 %v4170_v10  ;;  %v4709_v22 = vld [vmem:[%s6990_s7 + $0x78] sm:$0xff] }
 0x17b   :  { %v1879_v28 = vmax.f32 %v1859_v40, 0.0  ;;  %v1880_v18 = vmax.f32 %v1860_v11, 0.0  ;;  %v4234_v40 = vor.u32 %v4685_v12, %v4233_v41  ;;  %v4171_v11 = vld [vmem:[%s6988_s5 + $0x38] sm:$0xf0] }
 0x17d   :  { %v1883_v19 = vpack.c.bf16 %v1879_v28, %v1875_v17  ;;  %v1884_v21 = vpack.c.bf16 %v1880_v18, %v1876_v59  ;;  %v4684_v17 = vld [vmem:[%s6988_s5 + $0xb4] sm:$0xf]  ;;  %v4235_v59 = vld [vmem:[%s6988_s5 + $0xb8] sm:$0xf0]  ;;  %v6817_v28 = vld [vmem:[#allocation1] sm:$0xff]  ;;  %2626 = vmatpush.bf16.msrb.mxu1 %v4234_v40 }
 0x17e   :  { %v6819_v18 = vld [vmem:[#allocation1 + $0x9] sm:$0xff]  ;;  %2613 = vmatpush.bf16.msrb.mxu0 %v4162_v63 }
 0x17f   :  { %2305 = vmatmul.bf16.vlgmr.msrb.gmra.mxu2 %v1883_v19  ;;  %2319 = vmatmul.bf16.vlgmr.msrb.gmra.mxu3 %v1884_v21  ;;  %2668 = vst [vmem:[#allocation1] ss:$9 sm:$0xff] %v2666_v25  ;;  %v2391_v40 = vpack.i.b16 %v6819_v18, %v6819_v18 }
 0x180   :  { %2636 = vmatpush.bf16.msrb.mxu2 %v4206_v33  ;;  %2650 = vmatpush.bf16.msrb.mxu3 %v4270_v36  ;;  %v4163_v33 = vld [vmem:[%s6988_s5 + $0x28] sm:$0xf0] }
 0x181   :  { %v4166_v35 = vor.u32 %v4666_v30, %v4163_v33  ;;  %v4227_v36 = vld [vmem:[%s6988_s5 + $0xa8] sm:$0xf0]  ;;  %2627 = vmatpush.bf16.msrb.mxu1 %v4226_v31  ;;  %v2393_v32 = vperm.slane %v2391_v40, 0 }
 0x182   :  { %v4230_v38 = vor.u32 %v4682_v34, %v4227_v36  ;;  %2614 = vmatpush.bf16.msrb.mxu0 %v4154_v5 }
 0x183   :  { %v2399_v30 = vunpack.c.l.bf16 %v2393_v32 }
 0x184   :  { %2637 = vmatpush.bf16.msrb.mxu2 %v4198_v57  ;;  %2651 = vmatpush.bf16.msrb.mxu3 %v4262_v49  ;;  %v4664_v57 = vld [vmem:[%s6988_s5 + $0x14] sm:$0xf] }
 0x185   :  { %v4158_v51 = vor.u32 %v4664_v57, %v4155_v47  ;;  %2628 = vmatpush.bf16.msrb.mxu1 %v4218_v50  ;;  %v4708_v50 = vld [vmem:[%s6990_s7 + $0x70] sm:$0xff] }
 0x188   :  { %2638 = vmatpush.bf16.msrb.mxu2 %v4190_v20  ;;  %2652 = vmatpush.bf16.msrb.mxu3 %v4254_v58  ;;  %v4146_v20 = vor.u32 %v4663_v62, %v4145_v53  ;;  %v4147_v58 = vld [vmem:[%s6988_s5 + $0x8] sm:$0xf0]  ;;  %v4697_v53 = vld [vmem:[%s6990_s7 + $0x18] sm:$0xff] }
 0x189   :  { %v4150_v3 = vor.u32 %v4662_v16, %v4147_v58  ;;  %2629 = vmatpush.bf16.msrb.mxu1 %v4210_v1  ;;  %v4705_v62 = vld [vmem:[%s6990_s7 + $0x58] sm:$0xff]  ;;  %v4703_v16 = vld [vmem:[%s6990_s7 + $0x48] sm:$0xff]  ;;  %v4694_v58 = vld [vmem:[%s6990_s7] sm:$0xff] }
 0x18a   :  { %2615 = vmatpush.bf16.msrb.mxu0 %v4146_v20  ;;  %v4704_v20 = vld [vmem:[%s6990_s7 + $0x50] sm:$0xff]  ;;  %v4702_v1 = vld [vmem:[%s6990_s7 + $0x40] sm:$0xff] }
 0x18c   :  { %2639 = vmatpush.bf16.msrb.mxu2 %v4182_v42  ;;  %2653 = vmatpush.bf16.msrb.mxu3 %v4246_v24 }
 0x18d   :  { %2841 = vmatpush.bf16.msra.mxu1 %v4709_v22 }
 0x18e   :  { %2827 = vmatpush.bf16.msra.mxu0 %v4701_v9  ;;  %v2670_v9 = vld [vmem:[#allocation1 + $0x9] sm:$0xff] }
 0x18f   :  { %2361 = vmatmul.bf16.vlgmr.msra.gmra.mxu2 %v1883_v19  ;;  %2375 = vmatmul.bf16.vlgmr.msra.gmra.mxu3 %v1884_v21  ;;  %v4174_v19 = vor.u32 %v4668_v15, %v4171_v11  ;;  %v4238_v21 = vor.u32 %v4684_v17, %v4235_v59  ;;  %v2388_v15 = vpack.i.b16 %v6817_v28, %v6817_v28 }
 0x191   :  { %2640 = vmatpush.bf16.msrb.mxu2 %v4174_v19  ;;  %2654 = vmatpush.bf16.msrb.mxu3 %v4238_v21  ;;  %v2390_v54 = vperm.slane %v2388_v15, 0 }
 0x192   :  { %2842 = vmatpush.bf16.msra.mxu1 %v4708_v50 }
 0x193   :  { %v2398_v26 = vunpack.c.l.bf16 %v2390_v54 }
 0x194   :  { %v6786_v37 = vpop.f32.mrf.mxu0  ;;  %v6788_v46 = vpop.f32.mrf.mxu1 }
 0x195   :  { %2641 = vmatpush.bf16.msrb.mxu2 %v4166_v35  ;;  %2655 = vmatpush.bf16.msrb.mxu3 %v4230_v38  ;;  %v2293_v24 = vadd.f32 %v6788_v46, %v6786_v37 }
 0x196   :  { %2843 = vmatpush.bf16.msra.mxu1 %v4707_v8 }
 0x199   :  { %2642 = vmatpush.bf16.msrb.mxu2 %v4158_v51  ;;  %2656 = vmatpush.bf16.msrb.mxu3 %v4222_v7  ;;  %v4699_v51 = vld [vmem:[%s6990_s7 + $0x28] sm:$0xff]  ;;  %v4706_v7 = vld [vmem:[%s6990_s7 + $0x60] sm:$0xff] }
 0x19a   :  { %2844 = vmatpush.bf16.msra.mxu1 %v4706_v7 }
 0x19c   :  { %v2280_v44 = vpop.f32.mrf.mxu0  ;;  %v2294_v45 = vpop.f32.mrf.mxu1 }
 0x19d   :  { %2643 = vmatpush.bf16.msrb.mxu2 %v4150_v3  ;;  %2657 = vmatpush.bf16.msrb.mxu3 %v4214_v23  ;;  %v2295_v19 = vadd.f32 %v2294_v45, %v2280_v44  ;;  %v4717_v3 = vld [vmem:[%s6991_s9 + $0x38] sm:$0xff] }
 0x19e   :  { %2845 = vmatpush.bf16.msra.mxu1 %v4705_v62 }
 0x1a1   :  { %2941 = vmatpush.bf16.msra.mxu2 %v4717_v3 }
 0x1a2   :  { %2846 = vmatpush.bf16.msra.mxu1 %v4704_v20 }
 0x1a4   :  { %v2334_v42 = vpop.f32.mrf.mxu0  ;;  %v2348_v43 = vpop.f32.mrf.mxu1 }
 0x1a5   :  { %v2349_v0 = vadd.f32 %v2348_v43, %v2334_v42  ;;  %2942 = vmatpush.bf16.msra.mxu2 %v4716_v60 }
 0x1a6   :  { %2847 = vmatpush.bf16.msra.mxu1 %v4703_v16 }
 0x1a9   :  { %2943 = vmatpush.bf16.msra.mxu2 %v4715_v4 }
 0x1aa   :  { %2848 = vmatpush.bf16.msra.mxu1 %v4702_v1  ;;  %v2890_v1 = vld [vmem:[%s6993_s10] sm:$0x1] }
 0x1ab   :  { %v2891_v60 = vunpack.c.l.bf16 %v2890_v1 }
 0x1ac   :  { %v2336_v17 = vpop.f32.mrf.mxu0  ;;  %v2350_v59 = vpop.f32.mrf.mxu1 }
 0x1ad   :  { %v2351_v39 = vadd.f32 %v2350_v59, %v2336_v17  ;;  %v2892_v4 = vperm.slane %v2891_v60, 0 }
 0x202   :  { %v2306_v48 = vpop.f32.mrf.mxu2  ;;  %v2320_v49 = vpop.f32.mrf.mxu3 }
 0x203   :  { %v2307_v41 = vadd.f32 %v2306_v48, %v2293_v24  ;;  %v2674_v24 = vpack.i.b16 %v2670_v9, %v2670_v9 }
 0x205   :  { %v2321_v21 = vadd.f32 %v2320_v49, %v2307_v41  ;;  %v4700_v49 = vld [vmem:[%s6990_s7 + $0x30] sm:$0xff]  ;;  %v2676_v41 = vperm.slane %v2674_v24, 0 }
 0x206   :  { %2828 = vmatpush.bf16.msra.mxu0 %v4700_v49 }
 0x207   :  { %v2682_v17 = vunpack.c.l.bf16 %v2676_v41 }
 0x20a   :  { %v2308_v6 = vpop.f32.mrf.mxu2  ;;  %v2322_v27 = vpop.f32.mrf.mxu3  ;;  %2829 = vmatpush.bf16.msra.mxu0 %v4699_v51 }
 0x20b   :  { %v2309_v37 = vadd.f32 %v2308_v6, %v2295_v19 }
 0x20d   :  { %v2323_v33 = vadd.f32 %v2322_v27, %v2309_v37  ;;  %v2669_v27 = vld [vmem:[#allocation1] sm:$0xff] }
 0x20e   :  { %2830 = vmatpush.bf16.msra.mxu0 %v4698_v52  ;;  %v2671_v43 = vpack.i.b16 %v2669_v27, %v2669_v27 }
 0x212   :  { %v2362_v29 = vpop.f32.mrf.mxu2  ;;  %v2376_v10 = vpop.f32.mrf.mxu3  ;;  %2831 = vmatpush.bf16.msra.mxu0 %v4697_v53 }
 0x213   :  { %v2363_v12 = vadd.f32 %v2362_v29, %v2349_v0 }
 0x215   :  { %v2377_v11 = vadd.f32 %v2376_v10, %v2363_v12  ;;  %v2673_v10 = vperm.slane %v2671_v43, 0 }
 0x216   :  { %2832 = vmatpush.bf16.msra.mxu0 %v4696_v2 }
 0x217   :  { %v2381_v46 = vpack.c.bf16 %v2377_v11, %v2321_v21  ;;  %v2681_v11 = vunpack.c.l.bf16 %v2673_v10 }
 0x219   :  { %v2394_v28 = vunpack.c.l.bf16 %v2381_v46  ;;  %v2395_v34 = vunpack.c.h.bf16 %v2381_v46 }
 0x21a   :  { %v2364_v25 = vpop.f32.mrf.mxu2  ;;  %v2378_v31 = vpop.f32.mrf.mxu3  ;;  %2833 = vmatpush.bf16.msra.mxu0 %v4695_v56 }
 0x21b   :  { %v2365_v63 = vadd.f32 %v2364_v25, %v2351_v39  ;;  %v2400_v36 = vadd.f32 %v2398_v26, %v2394_v28  ;;  %v2401_v38 = vadd.f32 %v2399_v30, %v2395_v34 }
 0x21d   :  { %v2379_v35 = vadd.f32 %v2378_v31, %v2365_v63  ;;  %v2410_v45 = vmax.f32 %v2400_v36, 0.0  ;;  %v2411_v5 = vmax.f32 %v2401_v38, 0.0  ;;  %v4714_v38 = vld [vmem:[%s6991_s9 + $0x20] sm:$0xff] }
 0x21e   :  { %2834 = vmatpush.bf16.msra.mxu0 %v4694_v58  ;;  %2944 = vmatpush.bf16.msra.mxu2 %v4714_v38 }
 0x21f   :  { %v2382_v18 = vpack.c.bf16 %v2379_v35, %v2323_v33 }
 0x221   :  { %v2396_v14 = vunpack.c.l.bf16 %v2382_v18  ;;  %v2397_v55 = vunpack.c.h.bf16 %v2382_v18 }
 0x223   :  { %v2402_v61 = vadd.f32 %v2398_v26, %v2396_v14  ;;  %v2403_v44 = vadd.f32 %v2399_v30, %v2397_v55  ;;  %v4713_v14 = vld [vmem:[%s6991_s9 + $0x18] sm:$0xff]  ;;  %v4712_v55 = vld [vmem:[%s6991_s9 + $0x10] sm:$0xff] }
 0x224   :  { %2945 = vmatpush.bf16.msra.mxu2 %v4713_v14 }
 0x225   :  { %v2412_v13 = vmax.f32 %v2402_v61, 0.0  ;;  %v2413_v57 = vmax.f32 %v2403_v44, 0.0  ;;  %v4711_v61 = vld [vmem:[%s6991_s9 + $0x8] sm:$0xff]  ;;  %v4710_v44 = vld [vmem:[%s6991_s9] sm:$0xff] }
 0x227   :  { %v2414_v47 = vpack.c.bf16 %v2412_v13, %v2410_v45  ;;  %v2415_v48 = vpack.c.bf16 %v2413_v57, %v2411_v5  ;;  %v2857_v45 = vld [vmem:[%s6992_s8] sm:$0x1] }
 0x228   :  { %2946 = vmatpush.bf16.msra.mxu2 %v4712_v55 }
 0x229   :  { %2616 = vmatmul.bf16.vlgmr.msrb.gmra.mxu0 %v2414_v47  ;;  %2630 = vmatmul.bf16.vlgmr.msrb.gmra.mxu1 %v2415_v48 }
 0x22a   :  { %2644 = vmatmul.bf16.vlgmr.msrb.gmra.mxu2 %v2414_v47  ;;  %2658 = vmatmul.bf16.vlgmr.msrb.gmra.mxu3 %v2415_v48  ;;  %v2859_v47 = vpack.i.b16 %v2857_v45, %v2857_v45 }
 0x22c   :  { %2947 = vmatpush.bf16.msra.mxu2 %v4711_v61  ;;  %v2861_v49 = vperm.slane %v2859_v47, 0 }
 0x22e   :  { %v2864_v52 = vunpack.c.l.bf16 %v2861_v49 }
 0x230   :  { %2948 = vmatpush.bf16.msra.mxu2 %v4710_v44 }
 0x2a6   :  { %v2617_v23 = vpop.f32.mrf.mxu0  ;;  %v2631_v6 = vpop.f32.mrf.mxu1 }
 0x2a7   :  { %v2632_v29 = vadd.f32 %v2631_v6, %v2617_v23 }
 0x2ad   :  { %v2645_v22 = vpop.f32.mrf.mxu2  ;;  %v2659_v42 = vpop.f32.mrf.mxu3 }
 0x2ae   :  { %v2660_v0 = vadd.f32 %v2659_v42, %v2645_v22  ;;  %v2619_v15 = vpop.f32.mrf.mxu0  ;;  %v2633_v40 = vpop.f32.mrf.mxu1 }
 0x2af   :  { %v2634_v32 = vadd.f32 %v2633_v40, %v2619_v15 }
 0x2b0   :  { %v2664_v12 = vpack.c.bf16 %v2660_v0, %v2632_v29 }
 0x2b2   :  { %v2677_v21 = vunpack.c.l.bf16 %v2664_v12  ;;  %v2678_v54 = vunpack.c.h.bf16 %v2664_v12 }
 0x2b4   :  { %v2683_v46 = vadd.f32 %v2681_v11, %v2677_v21  ;;  %v2684_v25 = vadd.f32 %v2682_v17, %v2678_v54 }
 0x2b5   :  { %v2647_v59 = vpop.f32.mrf.mxu2  ;;  %v2661_v19 = vpop.f32.mrf.mxu3 }
 0x2b6   :  { %v2662_v39 = vadd.f32 %v2661_v19, %v2647_v59  ;;  %v2693_v33 = vmax.f32 %v2683_v46, 0.0  ;;  %v2694_v28 = vmax.f32 %v2684_v25, 0.0 }
 0x2b8   :  { %v2665_v37 = vpack.c.bf16 %v2662_v39, %v2634_v32 }
 0x2ba   :  { %v2679_v63 = vunpack.c.l.bf16 %v2665_v37  ;;  %v2680_v26 = vunpack.c.h.bf16 %v2665_v37 }
 0x2bc   :  { %v2685_v30 = vadd.f32 %v2681_v11, %v2679_v63  ;;  %v2686_v31 = vadd.f32 %v2682_v17, %v2680_v26 }
 0x2be   :  { %v2695_v34 = vmax.f32 %v2685_v30, 0.0  ;;  %v2696_v35 = vmax.f32 %v2686_v31, 0.0 }
 0x2c0   :  { %v2697_v18 = vpack.c.bf16 %v2695_v34, %v2693_v33  ;;  %v2698_v36 = vpack.c.bf16 %v2696_v35, %v2694_v28 }
 0x2c2   :  { %2835 = vmatmul.bf16.vlgmr.msra.gmra.mxu0 %v2697_v18  ;;  %2849 = vmatmul.bf16.vlgmr.msra.gmra.mxu1 %v2698_v36 }
 0x33f   :  { %v2836_v5 = vpop.f32.mrf.mxu0  ;;  %v2850_v13 = vpop.f32.mrf.mxu1 }
 0x340   :  { %v2851_v57 = vadd.f32 %v2850_v13, %v2836_v5 }
 0x342   :  { %v2855_v48 = vpack.c.bf16 %v2851_v57, %v2851_v57 }
 0x344   :  { %v2862_v8 = vunpack.c.l.bf16 %v2855_v48 }
 0x346   :  { %v2865_v62 = vadd.f32 %v2864_v52, %v2862_v8 }
 0x347   :  { %v2838_v50 = vpop.f32.mrf.mxu0  ;;  %v2852_v51 = vpop.f32.mrf.mxu1 }
 0x348   :  { %v2853_v7 = vadd.f32 %v2852_v51, %v2838_v50  ;;  %v2871_v56 = vmax.f32 %v2865_v62, 0.0 }
 0x34a   :  { %v2856_v53 = vpack.c.bf16 %v2853_v7, %v2853_v7 }
 0x34c   :  { %v2863_v2 = vunpack.c.l.bf16 %v2856_v53 }
 0x34e   :  { %v2866_v20 = vadd.f32 %v2864_v52, %v2863_v2 }
 0x350   :  { %v2872_v16 = vmax.f32 %v2866_v20, 0.0 }
 0x352   :  { %v2873_v58 = vpack.c.bf16 %v2872_v16, %v2871_v56 }
 0x354   :  { %2949 = vmatmul.bf16.vlgmr.msra.gmra.mxu2 %v2873_v58 }
 0x3d7   :  { %v2950_v3 = vpop.f32.mrf.mxu2 }
 0x3d8   :  { %v2951_v6 = vadd.f32 %v2950_v3, %v2892_v4 }
 0x3df   :  { %v2952_v23 = vpop.f32.mrf.mxu2 }
 0x3e0   :  { %v2953_v27 = vadd.f32 %v2952_v23, %v2892_v4 }
 0x3e2   :  { %v4721_v9 = vpack.c.bf16 %v2953_v27, %v2951_v6 }
 0x3e4   :  { %4722 = vst [vmem:[%s6994_s11] sm:$0xff] %v4721_v9  }

</bundles_post_ra>
